<compile_context>
chip_gen: v7x
topology: tpu7x:2x2x1
jax: 0.10.0
libtpu: 0.0.40
codegen_flags: <defaults>
</compile_context>

<pallas_src>
import jax
import jax.numpy as jnp
from jax.experimental import pallas as pl
from jax.experimental.pallas import tpu as pltpu

BN_EPS = 1e-5
GINE_EPS = 0.0          # eps=0.0, train_eps=False in the reference module
NUM_LAYERS = 5


def _spec(shape):
    nd = len(shape)
    return pl.BlockSpec(shape, lambda i, _nd=nd: (0,) * _nd)


# ----------------------------- fused kernel -------------------------------- #

def fused_gine_kernel(node_ref, ea_ref, src_ref, dst_ref, w_ref, p_ref, o_ref):
    """Whole GINE forward in one kernel; all operands resident in VMEM.

    node_ref : [N, Dp+1] f32  cols 0:Dp = zero-padded X, col Dp = X_importance
    ea_ref   : [E, Dp]   f32  zero-padded edge_attr
    src_ref  : [E, 1]    i32  edge_index[0] (source nodes)
    dst_ref  : [1, E]    i32  edge_index[1] (target nodes)
    w_ref    : [11,Dp,Dp] f32 0..4 edge linears, 5..9 node linears, 10 fc1
    p_ref    : [14, Dp]  f32  0..4 edge biases, 5..9 node biases,
                              10/11 bn_in gamma/beta, 12/13 bn_ine gamma/beta
    o_ref    : [N, out_pad] f32  layer k -> cols [k*Dp,(k+1)*Dp), fc1 -> [5*Dp,6*Dp)
    """
    f32 = jnp.float32
    N = node_ref.shape[0]
    E = ea_ref.shape[0]
    Dp = w_ref.shape[-1]

    pv = p_ref[...]                                   # tiny: load once, value-slice

    def batchnorm(v, g, b):
        # BatchNorm1d, training mode: batch stats, biased variance, one pass.
        mean = jnp.mean(v, axis=0, keepdims=True)
        mean_sq = jnp.mean(v * v, axis=0, keepdims=True)
        var = mean_sq - mean * mean
        return (v - mean) * jax.lax.rsqrt(var + BN_EPS) * g + b

    node = node_ref[...]
    # bn_in(X * X_importance), bn_ine(edge_attr)
    x = batchnorm(node[:, :Dp] * node[:, Dp:Dp + 1], pv[10:11, :], pv[11:12, :])
    ea = batchnorm(ea_ref[...], pv[12:13, :], pv[13:14, :])

    # One-hot gather/scatter operators built ONCE (VPU compare), reused by all
    # 5 convs on the MXU.  gather[e, n] = (src[e] == n);
    # scatter_t[i, e] = (dst[e] == i) -> scatter-ADD via matmul.
    gather = (jax.lax.broadcasted_iota(jnp.int32, (E, N), 1)
              == src_ref[...]).astype(f32)                       # [E, N]
    scatter_t = (jax.lax.broadcasted_iota(jnp.int32, (N, E), 0)
                 == dst_ref[...]).astype(f32)                    # [N, E]

    # Zero only the pad tail of the output slab once.
    tail = o_ref.shape[1] - (NUM_LAYERS + 1) * Dp
    if tail > 0:
        o_ref[:, (NUM_LAYERS + 1) * Dp:] = jnp.zeros((N, tail), f32)

    for k in range(NUM_LAYERS):
        # edge MLP: Linear + Tanh
        ea = jnp.tanh(jnp.dot(ea, w_ref[k], preferred_element_type=f32)
                      + pv[k:k + 1, :])
        # GINEConv: aggr[i] = sum_{e: dst[e]=i} relu(x[src[e]] + edge_attr[e])
        x_src = jnp.dot(gather, x, preferred_element_type=f32)        # [E, Dp]
        msg = jnp.maximum(x_src + ea, 0.0)
        aggr = jnp.dot(scatter_t, msg, preferred_element_type=f32)    # [N, Dp]
        h = aggr + (1.0 + GINE_EPS) * x
        # node MLP: Linear + Tanh
        x = jnp.tanh(jnp.dot(h, w_ref[NUM_LAYERS + k], preferred_element_type=f32)
                     + pv[NUM_LAYERS + k:NUM_LAYERS + k + 1, :])
        o_ref[:, k * Dp:(k + 1) * Dp] = x                  # direct slab store

    # tanh(fc1(x)), bias=False (fc1 zero-padded to [Dp,Dp]; padded cols -> 0)
    o_ref[:, NUM_LAYERS * Dp:(NUM_LAYERS + 1) * Dp] = jnp.tanh(
        jnp.dot(x, w_ref[2 * NUM_LAYERS], preferred_element_type=f32))


# ----------------------------- parameters ---------------------------------- #

def _linear_init(key, fan_in, fan_out):
    # torch.nn.Linear default: U(-1/sqrt(fan_in), 1/sqrt(fan_in)) for W and b.
    kw, kb = jax.random.split(key)
    bound = 1.0 / jnp.sqrt(float(fan_in))
    w = jax.random.uniform(kw, (fan_in, fan_out), jnp.float32, -bound, bound)
    b = jax.random.uniform(kb, (fan_out,), jnp.float32, -bound, bound)
    return w, b


def init_params(key, in_channels, out_channels, dim, in_channels_e):
    params = {
        "bn_in_gamma": jnp.ones((in_channels,), jnp.float32),
        "bn_in_beta": jnp.zeros((in_channels,), jnp.float32),
        "bn_ine_gamma": jnp.ones((in_channels_e,), jnp.float32),
        "bn_ine_beta": jnp.zeros((in_channels_e,), jnp.float32),
    }
    e_dims = [(in_channels_e, in_channels), (in_channels, dim),
              (dim, dim), (dim, dim), (dim, dim)]
    n_dims = [(in_channels, dim)] + [(dim, dim)] * 4
    keys = jax.random.split(key, 11)
    for k in range(5):
        we, be = _linear_init(keys[2 * k], *e_dims[k])
        wn, bn = _linear_init(keys[2 * k + 1], *n_dims[k])
        params[f"nn{k + 1}e_w"], params[f"nn{k + 1}e_b"] = we, be
        params[f"nn{k + 1}_w"], params[f"nn{k + 1}_b"] = wn, bn
    wf, _ = _linear_init(keys[10], dim, out_channels)
    params["fc1_w"] = wf                                   # bias=False
    return params


def pack_params(params, in_channels, out_channels, dim, in_channels_e):
    """Pack all weights/biases/BN params into two lane-contiguous slabs (once)."""
    dp = max(dim, in_channels, in_channels_e, out_channels)
    dp = ((dp + 7) // 8) * 8

    def pad_w(w):
        return jnp.pad(w.astype(jnp.float32),
                       ((0, dp - w.shape[0]), (0, dp - w.shape[1])))

    def pad_v(v):
        return jnp.pad(v.astype(jnp.float32), ((0, dp - v.shape[0]),))

    w_all = jnp.stack(
        [pad_w(params[f"nn{k + 1}e_w"]) for k in range(NUM_LAYERS)]
        + [pad_w(params[f"nn{k + 1}_w"]) for k in range(NUM_LAYERS)]
        + [pad_w(params["fc1_w"])], axis=0)                 # [11, dp, dp]

    pvec = jnp.stack(
        [pad_v(params[f"nn{k + 1}e_b"]) for k in range(NUM_LAYERS)]
        + [pad_v(params[f"nn{k + 1}_b"]) for k in range(NUM_LAYERS)]
        + [pad_v(params["bn_in_gamma"]), pad_v(params["bn_in_beta"]),
           pad_v(params["bn_ine_gamma"]), pad_v(params["bn_ine_beta"])],
        axis=0)                                             # [14, dp]

    meta = {"dp": dp, "dim": dim, "out_channels": out_channels}
    return {"w_all": w_all, "pvec": pvec, "meta": meta}


# ----------------------------- forward -------------------------------------- #

def _tile_padded_bytes(arr):
    shape = arr.shape
    lead = 1
    for d in shape[:-2]:
        lead *= d
    r = shape[-2] if len(shape) >= 2 else 1
    c = shape[-1]
    rp = ((r + 7) // 8) * 8
    cp = ((c + 127) // 128) * 128
    return lead * rp * cp * jnp.dtype(arr.dtype).itemsize


def gine_forward(packed, X, X_importance, edge_index, edge_attr):
    w_all, pvec, meta = packed["w_all"], packed["pvec"], packed["meta"]
    dp, dim, out_ch = meta["dp"], meta["dim"], meta["out_channels"]

    N = X.shape[0]
    E = edge_attr.shape[0]
    out_feats = NUM_LAYERS * dim + out_ch
    slab_w = (NUM_LAYERS + 1) * dp
    out_pad = ((max(out_feats, slab_w) + 127) // 128) * 128   # lane-dense output

    node_in = jnp.concatenate(
        [jnp.pad(X.astype(jnp.float32), ((0, 0), (0, dp - X.shape[1]))),
         X_importance.astype(jnp.float32).reshape(N, 1)], axis=1)     # [N, dp+1]
    ea_in = jnp.pad(edge_attr.astype(jnp.float32),
                    ((0, 0), (0, dp - edge_attr.shape[1])))           # [E, dp]
    src = edge_index[0].astype(jnp.int32).reshape(E, 1)
    dst = edge_index[1].astype(jnp.int32).reshape(1, E)

    ops = [node_in, ea_in, src, dst, w_all, pvec]   # 6 input DMAs total

    # vmem_limit derived from actual tile-padded operand sizes (x2 for the
    # auto-pipeline double buffers) + headroom for in-kernel temporaries.
    io_bytes = sum(_tile_padded_bytes(a) for a in ops)
    out_bytes = (((N + 7) // 8) * 8) * out_pad * 4
    vmem_limit = int(min(64 * 1024 * 1024,
                         2 * (io_bytes + out_bytes) + 8 * 1024 * 1024))

    # Advisory cost estimate for XLA scheduling around the fused call.
    flops, trans = 0, 0
    for _ in range(NUM_LAYERS):
        flops += 2 * E * dp * dp + 2 * N * dp * dp          # edge / node linears
        flops += 2 * E * N * dp + 2 * N * E * dp            # gather + scatter-add
        trans += E * dp + N * dp                            # tanh
    flops += 2 * N * dp * dp                                # fc1
    trans += N * dp
    bytes_accessed = sum(int(a.size) * jnp.dtype(a.dtype).itemsize for a in ops)
    bytes_accessed += N * out_pad * 4

    out = pl.pallas_call(
        fused_gine_kernel,
        grid=(1,),
        in_specs=[_spec(a.shape) for a in ops],
        out_specs=_spec((N, out_pad)),
        out_shape=jax.ShapeDtypeStruct((N, out_pad), jnp.float32),
        compiler_params=pltpu.CompilerParams(
            dimension_semantics=("arbitrary",),
            vmem_limit_bytes=vmem_limit),
        cost_estimate=pl.CostEstimate(
            flops=int(flops), transcendentals=int(trans),
            bytes_accessed=int(bytes_accessed)),
    )(*ops)

    if dp == dim:
        return out[:, :out_feats]                  # cat(xs[1:], dim=-1)
    # General case (dp > dim): per-layer blocks are strided by dp in the slab.
    pieces = [out[:, k * dp:k * dp + dim] for k in range(NUM_LAYERS)]
    pieces.append(out[:, NUM_LAYERS * dp:NUM_LAYERS * dp + out_ch])
    return jnp.concatenate(pieces, axis=-1)


# ----------------------------- main ----------------------------------------- #

if __name__ == "__main__":
    in_channels, out_channels, dim, in_channels_e = 8, 4, 32, 6
    N, E = 16, 48

    key = jax.random.PRNGKey(0)
    kx, ki, ke, ks, kd, kp = jax.random.split(key, 6)

    X = jax.random.normal(kx, (N, in_channels), jnp.float32)
    X_importance = jax.random.uniform(ki, (N, 1), jnp.float32)
    edge_attr = jax.random.normal(ke, (E, in_channels_e), jnp.float32)
    src_idx = jax.random.randint(ks, (E,), 0, N)
    dst_idx = jax.random.randint(kd, (E,), 0, N)
    edge_index = jnp.stack([src_idx, dst_idx], axis=0)      # [2, E]

    params = init_params(kp, in_channels, out_channels, dim, in_channels_e)
    packed = pack_params(params, in_channels, out_channels, dim, in_channels_e)

    out = gine_forward(packed, X, X_importance, edge_index, edge_attr)
    out = jax.block_until_ready(out)

    assert out.shape == (N, 5 * dim + out_channels), out.shape
    assert bool(jnp.all(jnp.isfinite(out)))
    print("KERNEL_OK")
</pallas_src>

<mosaic_0001>
module attributes {stable_mosaic.version = 11 : i64} {
  func.func @fused_gine_kernel(%arg0: i32, %arg1: memref<16x33xf32, #tpu.memory_space<vmem>>, %arg2: memref<48x32xf32, #tpu.memory_space<vmem>>, %arg3: memref<48x1xi32, #tpu.memory_space<vmem>>, %arg4: memref<1x48xi32, #tpu.memory_space<vmem>>, %arg5: memref<11x32x32xf32, #tpu.memory_space<vmem>>, %arg6: memref<14x32xf32, #tpu.memory_space<vmem>>, %arg7: memref<16x256xf32, #tpu.memory_space<vmem>>) attributes {dimension_semantics = [#tpu.dimension_semantics<arbitrary>], iteration_bounds = array<i64: 1>, scalar_prefetch = 0 : i64, scratch_operands = 0 : i64, tpu.core_type = #tpu.core_type<tc>, window_params = [{pipeline_mode = #tpu.pipeline_mode<synchronous>, transform_indices = @transform_0, window_bounds = array<i64: 16, 33>}, {pipeline_mode = #tpu.pipeline_mode<synchronous>, transform_indices = @transform_1, window_bounds = array<i64: 48, 32>}, {pipeline_mode = #tpu.pipeline_mode<synchronous>, transform_indices = @transform_2, window_bounds = array<i64: 48, 1>}, {pipeline_mode = #tpu.pipeline_mode<synchronous>, transform_indices = @transform_3, window_bounds = array<i64: 1, 48>}, {pipeline_mode = #tpu.pipeline_mode<synchronous>, transform_indices = @transform_4, window_bounds = array<i64: 11, 32, 32>}, {pipeline_mode = #tpu.pipeline_mode<synchronous>, transform_indices = @transform_5, window_bounds = array<i64: 14, 32>}, {pipeline_mode = #tpu.pipeline_mode<synchronous>, transform_indices = @transform_6, window_bounds = array<i64: 16, 256>}]} {
    %c0 = arith.constant 0 : index
    %c0_0 = arith.constant 0 : index
    %0 = vector.load %arg6[%c0, %c0_0] : memref<14x32xf32, #tpu.memory_space<vmem>>, vector<14x32xf32>
    %c0_1 = arith.constant 0 : index
    %c0_2 = arith.constant 0 : index
    %1 = vector.load %arg1[%c0_1, %c0_2] : memref<16x33xf32, #tpu.memory_space<vmem>>, vector<16x33xf32>
    %2 = vector.extract_strided_slice %1 {offsets = [0, 0], sizes = [16, 32], strides = [1, 1]} : vector<16x33xf32> to vector<16x32xf32>
    %3 = vector.extract_strided_slice %1 {offsets = [0, 32], sizes = [16, 1], strides = [1, 1]} : vector<16x33xf32> to vector<16x1xf32>
    %4 = vector.broadcast %3 : vector<16x1xf32> to vector<16x32xf32>
    %5 = arith.mulf %2, %4 : vector<16x32xf32>
    %6 = vector.extract_strided_slice %0 {offsets = [10, 0], sizes = [1, 32], strides = [1, 1]} : vector<14x32xf32> to vector<1x32xf32>
    %7 = vector.extract_strided_slice %0 {offsets = [11, 0], sizes = [1, 32], strides = [1, 1]} : vector<14x32xf32> to vector<1x32xf32>
    %cst = arith.constant dense<0.000000e+00> : vector<32xf32>
    %8 = vector.multi_reduction <add>, %5, %cst [0] : vector<16x32xf32> to vector<32xf32>
    %9 = vector.shape_cast %8 : vector<32xf32> to vector<1x32xf32>
    %cst_3 = arith.constant 1.600000e+01 : f32
    %10 = vector.broadcast %cst_3 : f32 to vector<1x32xf32>
    %11 = arith.divf %9, %10 : vector<1x32xf32>
    %12 = arith.mulf %5, %5 : vector<16x32xf32>
    %cst_4 = arith.constant dense<0.000000e+00> : vector<32xf32>
    %13 = vector.multi_reduction <add>, %12, %cst_4 [0] : vector<16x32xf32> to vector<32xf32>
    %14 = vector.shape_cast %13 : vector<32xf32> to vector<1x32xf32>
    %cst_5 = arith.constant 1.600000e+01 : f32
    %15 = vector.broadcast %cst_5 : f32 to vector<1x32xf32>
    %16 = arith.divf %14, %15 : vector<1x32xf32>
    %17 = arith.mulf %11, %11 : vector<1x32xf32>
    %18 = arith.subf %16, %17 : vector<1x32xf32>
    %19 = vector.broadcast %11 : vector<1x32xf32> to vector<16x32xf32>
    %20 = arith.subf %5, %19 : vector<16x32xf32>
    %cst_6 = arith.constant 9.99999974E-6 : f32
    %21 = vector.broadcast %cst_6 : f32 to vector<1x32xf32>
    %22 = arith.addf %18, %21 : vector<1x32xf32>
    %23 = math.rsqrt %22 : vector<1x32xf32>
    %24 = vector.broadcast %23 : vector<1x32xf32> to vector<16x32xf32>
    %25 = arith.mulf %20, %24 : vector<16x32xf32>
    %26 = vector.broadcast %6 : vector<1x32xf32> to vector<16x32xf32>
    %27 = arith.mulf %25, %26 : vector<16x32xf32>
    %28 = vector.broadcast %7 : vector<1x32xf32> to vector<16x32xf32>
    %29 = arith.addf %27, %28 : vector<16x32xf32>
    %c0_7 = arith.constant 0 : index
    %c0_8 = arith.constant 0 : index
    %30 = vector.load %arg2[%c0_7, %c0_8] : memref<48x32xf32, #tpu.memory_space<vmem>>, vector<48x32xf32>
    %31 = vector.extract_strided_slice %0 {offsets = [12, 0], sizes = [1, 32], strides = [1, 1]} : vector<14x32xf32> to vector<1x32xf32>
    %32 = vector.extract_strided_slice %0 {offsets = [13, 0], sizes = [1, 32], strides = [1, 1]} : vector<14x32xf32> to vector<1x32xf32>
    %cst_9 = arith.constant dense<0.000000e+00> : vector<32xf32>
    %33 = vector.multi_reduction <add>, %30, %cst_9 [0] : vector<48x32xf32> to vector<32xf32>
    %34 = vector.shape_cast %33 : vector<32xf32> to vector<1x32xf32>
    %cst_10 = arith.constant 4.800000e+01 : f32
    %35 = vector.broadcast %cst_10 : f32 to vector<1x32xf32>
    %36 = arith.divf %34, %35 : vector<1x32xf32>
    %37 = arith.mulf %30, %30 : vector<48x32xf32>
    %cst_11 = arith.constant dense<0.000000e+00> : vector<32xf32>
    %38 = vector.multi_reduction <add>, %37, %cst_11 [0] : vector<48x32xf32> to vector<32xf32>
    %39 = vector.shape_cast %38 : vector<32xf32> to vector<1x32xf32>
    %cst_12 = arith.constant 4.800000e+01 : f32
    %40 = vector.broadcast %cst_12 : f32 to vector<1x32xf32>
    %41 = arith.divf %39, %40 : vector<1x32xf32>
    %42 = arith.mulf %36, %36 : vector<1x32xf32>
    %43 = arith.subf %41, %42 : vector<1x32xf32>
    %44 = vector.broadcast %36 : vector<1x32xf32> to vector<48x32xf32>
    %45 = arith.subf %30, %44 : vector<48x32xf32>
    %cst_13 = arith.constant 9.99999974E-6 : f32
    %46 = vector.broadcast %cst_13 : f32 to vector<1x32xf32>
    %47 = arith.addf %43, %46 : vector<1x32xf32>
    %48 = math.rsqrt %47 : vector<1x32xf32>
    %49 = vector.broadcast %48 : vector<1x32xf32> to vector<48x32xf32>
    %50 = arith.mulf %45, %49 : vector<48x32xf32>
    %51 = vector.broadcast %31 : vector<1x32xf32> to vector<48x32xf32>
    %52 = arith.mulf %50, %51 : vector<48x32xf32>
    %53 = vector.broadcast %32 : vector<1x32xf32> to vector<48x32xf32>
    %54 = arith.addf %52, %53 : vector<48x32xf32>
    %55 = tpu.iota {dimensions = array<i32: 1>} : vector<48x16xi32>
    %c0_14 = arith.constant 0 : index
    %c0_15 = arith.constant 0 : index
    %56 = vector.load %arg3[%c0_14, %c0_15] : memref<48x1xi32, #tpu.memory_space<vmem>>, vector<48x1xi32>
    %57 = vector.broadcast %56 : vector<48x1xi32> to vector<48x16xi32>
    %58 = arith.cmpi eq, %55, %57 : vector<48x16xi32>
    %59 = arith.extui %58 : vector<48x16xi1> to vector<48x16xi32>
    %60 = arith.sitofp %59 : vector<48x16xi32> to vector<48x16xf32>
    %61 = tpu.iota {dimensions = array<i32: 0>} : vector<16x48xi32>
    %c0_16 = arith.constant 0 : index
    %c0_17 = arith.constant 0 : index
    %62 = vector.load %arg4[%c0_16, %c0_17] : memref<1x48xi32, #tpu.memory_space<vmem>>, vector<1x48xi32>
    %63 = vector.broadcast %62 : vector<1x48xi32> to vector<16x48xi32>
    %64 = arith.cmpi eq, %61, %63 : vector<16x48xi32>
    %65 = arith.extui %64 : vector<16x48xi1> to vector<16x48xi32>
    %66 = arith.sitofp %65 : vector<16x48xi32> to vector<16x48xf32>
    %cst_18 = arith.constant 0.000000e+00 : f32
    %67 = vector.broadcast %cst_18 : f32 to vector<16x64xf32>
    %c0_19 = arith.constant 0 : index
    %c192 = arith.constant 192 : index
    %68 = vector.load %arg7[%c0_19, %c192] : memref<16x256xf32, #tpu.memory_space<vmem>>, vector<16x64xf32>
    tpu.vector_store %arg7[%c0_19, %c192], %67 {strides = array<i32>} : memref<16x256xf32, #tpu.memory_space<vmem>>, vector<16x64xf32>,
    %c0_20 = arith.constant 0 : index
    %c0_21 = arith.constant 0 : index
    %c0_22 = arith.constant 0 : index
    %69 = vector.load %arg5[%c0_20, %c0_21, %c0_22] : memref<11x32x32xf32, #tpu.memory_space<vmem>>, vector<1x32x32xf32>
    %70 = vector.shape_cast %69 : vector<1x32x32xf32> to vector<32x32xf32>
    %cst_23 = arith.constant dense<0.000000e+00> : vector<48x32xf32>
    %71 = tpu.matmul %54, %70, %cst_23 {dimension_numbers = #tpu.dot_dimension_numbers<[1], [0], [0], [1], [0, 0, 1, 1], [], []>} : vector<48x32xf32>, vector<32x32xf32>, vector<48x32xf32> -> vector<48x32xf32>
    %72 = vector.extract_strided_slice %0 {offsets = [0, 0], sizes = [1, 32], strides = [1, 1]} : vector<14x32xf32> to vector<1x32xf32>
    %73 = vector.broadcast %72 : vector<1x32xf32> to vector<48x32xf32>
    %74 = arith.addf %71, %73 : vector<48x32xf32>
    %75 = math.tanh %74 : vector<48x32xf32>
    %cst_24 = arith.constant dense<0.000000e+00> : vector<48x32xf32>
    %76 = tpu.matmul %60, %29, %cst_24 {dimension_numbers = #tpu.dot_dimension_numbers<[1], [0], [0], [1], [0, 0, 1, 1], [], []>} : vector<48x16xf32>, vector<16x32xf32>, vector<48x32xf32> -> vector<48x32xf32>
    %77 = arith.addf %76, %75 : vector<48x32xf32>
    %cst_25 = arith.constant 0.000000e+00 : f32
    %78 = vector.broadcast %cst_25 : f32 to vector<48x32xf32>
    %79 = arith.maximumf %77, %78 : vector<48x32xf32>
    %cst_26 = arith.constant dense<0.000000e+00> : vector<16x32xf32>
    %80 = tpu.matmul %66, %79, %cst_26 {dimension_numbers = #tpu.dot_dimension_numbers<[1], [0], [0], [1], [0, 0, 1, 1], [], []>} : vector<16x48xf32>, vector<48x32xf32>, vector<16x32xf32> -> vector<16x32xf32>
    %cst_27 = arith.constant 1.000000e+00 : f32
    %81 = vector.broadcast %cst_27 : f32 to vector<16x32xf32>
    %82 = arith.mulf %81, %29 : vector<16x32xf32>
    %83 = arith.addf %80, %82 : vector<16x32xf32>
    %c5 = arith.constant 5 : index
    %c0_28 = arith.constant 0 : index
    %c0_29 = arith.constant 0 : index
    %84 = vector.load %arg5[%c5, %c0_28, %c0_29] : memref<11x32x32xf32, #tpu.memory_space<vmem>>, vector<1x32x32xf32>
    %85 = vector.shape_cast %84 : vector<1x32x32xf32> to vector<32x32xf32>
    %cst_30 = arith.constant dense<0.000000e+00> : vector<16x32xf32>
    %86 = tpu.matmul %83, %85, %cst_30 {dimension_numbers = #tpu.dot_dimension_numbers<[1], [0], [0], [1], [0, 0, 1, 1], [], []>} : vector<16x32xf32>, vector<32x32xf32>, vector<16x32xf32> -> vector<16x32xf32>
    %87 = vector.extract_strided_slice %0 {offsets = [5, 0], sizes = [1, 32], strides = [1, 1]} : vector<14x32xf32> to vector<1x32xf32>
    %88 = vector.broadcast %87 : vector<1x32xf32> to vector<16x32xf32>
    %89 = arith.addf %86, %88 : vector<16x32xf32>
    %90 = math.tanh %89 : vector<16x32xf32>
    %c0_31 = arith.constant 0 : index
    %c0_32 = arith.constant 0 : index
    %91 = vector.load %arg7[%c0_31, %c0_32] : memref<16x256xf32, #tpu.memory_space<vmem>>, vector<16x32xf32>
    tpu.vector_store %arg7[%c0_31, %c0_32], %90 {strides = array<i32>} : memref<16x256xf32, #tpu.memory_space<vmem>>, vector<16x32xf32>,
    %c1 = arith.constant 1 : index
    %c0_33 = arith.constant 0 : index
    %c0_34 = arith.constant 0 : index
    %92 = vector.load %arg5[%c1, %c0_33, %c0_34] : memref<11x32x32xf32, #tpu.memory_space<vmem>>, vector<1x32x32xf32>
    %93 = vector.shape_cast %92 : vector<1x32x32xf32> to vector<32x32xf32>
    %cst_35 = arith.constant dense<0.000000e+00> : vector<48x32xf32>
    %94 = tpu.matmul %75, %93, %cst_35 {dimension_numbers = #tpu.dot_dimension_numbers<[1], [0], [0], [1], [0, 0, 1, 1], [], []>} : vector<48x32xf32>, vector<32x32xf32>, vector<48x32xf32> -> vector<48x32xf32>
    %95 = vector.extract_strided_slice %0 {offsets = [1, 0], sizes = [1, 32], strides = [1, 1]} : vector<14x32xf32> to vector<1x32xf32>
    %96 = vector.broadcast %95 : vector<1x32xf32> to vector<48x32xf32>
    %97 = arith.addf %94, %96 : vector<48x32xf32>
    %98 = math.tanh %97 : vector<48x32xf32>
    %cst_36 = arith.constant dense<0.000000e+00> : vector<48x32xf32>
    %99 = tpu.matmul %60, %90, %cst_36 {dimension_numbers = #tpu.dot_dimension_numbers<[1], [0], [0], [1], [0, 0, 1, 1], [], []>} : vector<48x16xf32>, vector<16x32xf32>, vector<48x32xf32> -> vector<48x32xf32>
    %100 = arith.addf %99, %98 : vector<48x32xf32>
    %cst_37 = arith.constant 0.000000e+00 : f32
    %101 = vector.broadcast %cst_37 : f32 to vector<48x32xf32>
    %102 = arith.maximumf %100, %101 : vector<48x32xf32>
    %cst_38 = arith.constant dense<0.000000e+00> : vector<16x32xf32>
    %103 = tpu.matmul %66, %102, %cst_38 {dimension_numbers = #tpu.dot_dimension_numbers<[1], [0], [0], [1], [0, 0, 1, 1], [], []>} : vector<16x48xf32>, vector<48x32xf32>, vector<16x32xf32> -> vector<16x32xf32>
    %cst_39 = arith.constant 1.000000e+00 : f32
    %104 = vector.broadcast %cst_39 : f32 to vector<16x32xf32>
    %105 = arith.mulf %104, %90 : vector<16x32xf32>
    %106 = arith.addf %103, %105 : vector<16x32xf32>
    %c6 = arith.constant 6 : index
    %c0_40 = arith.constant 0 : index
    %c0_41 = arith.constant 0 : index
    %107 = vector.load %arg5[%c6, %c0_40, %c0_41] : memref<11x32x32xf32, #tpu.memory_space<vmem>>, vector<1x32x32xf32>
    %108 = vector.shape_cast %107 : vector<1x32x32xf32> to vector<32x32xf32>
    %cst_42 = arith.constant dense<0.000000e+00> : vector<16x32xf32>
    %109 = tpu.matmul %106, %108, %cst_42 {dimension_numbers = #tpu.dot_dimension_numbers<[1], [0], [0], [1], [0, 0, 1, 1], [], []>} : vector<16x32xf32>, vector<32x32xf32>, vector<16x32xf32> -> vector<16x32xf32>
    %110 = vector.extract_strided_slice %0 {offsets = [6, 0], sizes = [1, 32], strides = [1, 1]} : vector<14x32xf32> to vector<1x32xf32>
    %111 = vector.broadcast %110 : vector<1x32xf32> to vector<16x32xf32>
    %112 = arith.addf %109, %111 : vector<16x32xf32>
    %113 = math.tanh %112 : vector<16x32xf32>
    %c0_43 = arith.constant 0 : index
    %c32 = arith.constant 32 : index
    %114 = vector.load %arg7[%c0_43, %c32] : memref<16x256xf32, #tpu.memory_space<vmem>>, vector<16x32xf32>
    tpu.vector_store %arg7[%c0_43, %c32], %113 {strides = array<i32>} : memref<16x256xf32, #tpu.memory_space<vmem>>, vector<16x32xf32>,
    %c2 = arith.constant 2 : index
    %c0_44 = arith.constant 0 : index
    %c0_45 = arith.constant 0 : index
    %115 = vector.load %arg5[%c2, %c0_44, %c0_45] : memref<11x32x32xf32, #tpu.memory_space<vmem>>, vector<1x32x32xf32>
    %116 = vector.shape_cast %115 : vector<1x32x32xf32> to vector<32x32xf32>
    %cst_46 = arith.constant dense<0.000000e+00> : vector<48x32xf32>
    %117 = tpu.matmul %98, %116, %cst_46 {dimension_numbers = #tpu.dot_dimension_numbers<[1], [0], [0], [1], [0, 0, 1, 1], [], []>} : vector<48x32xf32>, vector<32x32xf32>, vector<48x32xf32> -> vector<48x32xf32>
    %118 = vector.extract_strided_slice %0 {offsets = [2, 0], sizes = [1, 32], strides = [1, 1]} : vector<14x32xf32> to vector<1x32xf32>
    %119 = vector.broadcast %118 : vector<1x32xf32> to vector<48x32xf32>
    %120 = arith.addf %117, %119 : vector<48x32xf32>
    %121 = math.tanh %120 : vector<48x32xf32>
    %cst_47 = arith.constant dense<0.000000e+00> : vector<48x32xf32>
    %122 = tpu.matmul %60, %113, %cst_47 {dimension_numbers = #tpu.dot_dimension_numbers<[1], [0], [0], [1], [0, 0, 1, 1], [], []>} : vector<48x16xf32>, vector<16x32xf32>, vector<48x32xf32> -> vector<48x32xf32>
    %123 = arith.addf %122, %121 : vector<48x32xf32>
    %cst_48 = arith.constant 0.000000e+00 : f32
    %124 = vector.broadcast %cst_48 : f32 to vector<48x32xf32>
    %125 = arith.maximumf %123, %124 : vector<48x32xf32>
    %cst_49 = arith.constant dense<0.000000e+00> : vector<16x32xf32>
    %126 = tpu.matmul %66, %125, %cst_49 {dimension_numbers = #tpu.dot_dimension_numbers<[1], [0], [0], [1], [0, 0, 1, 1], [], []>} : vector<16x48xf32>, vector<48x32xf32>, vector<16x32xf32> -> vector<16x32xf32>
    %cst_50 = arith.constant 1.000000e+00 : f32
    %127 = vector.broadcast %cst_50 : f32 to vector<16x32xf32>
    %128 = arith.mulf %127, %113 : vector<16x32xf32>
    %129 = arith.addf %126, %128 : vector<16x32xf32>
    %c7 = arith.constant 7 : index
    %c0_51 = arith.constant 0 : index
    %c0_52 = arith.constant 0 : index
    %130 = vector.load %arg5[%c7, %c0_51, %c0_52] : memref<11x32x32xf32, #tpu.memory_space<vmem>>, vector<1x32x32xf32>
    %131 = vector.shape_cast %130 : vector<1x32x32xf32> to vector<32x32xf32>
    %cst_53 = arith.constant dense<0.000000e+00> : vector<16x32xf32>
    %132 = tpu.matmul %129, %131, %cst_53 {dimension_numbers = #tpu.dot_dimension_numbers<[1], [0], [0], [1], [0, 0, 1, 1], [], []>} : vector<16x32xf32>, vector<32x32xf32>, vector<16x32xf32> -> vector<16x32xf32>
    %133 = vector.extract_strided_slice %0 {offsets = [7, 0], sizes = [1, 32], strides = [1, 1]} : vector<14x32xf32> to vector<1x32xf32>
    %134 = vector.broadcast %133 : vector<1x32xf32> to vector<16x32xf32>
    %135 = arith.addf %132, %134 : vector<16x32xf32>
    %136 = math.tanh %135 : vector<16x32xf32>
    %c0_54 = arith.constant 0 : index
    %c64 = arith.constant 64 : index
    %137 = vector.load %arg7[%c0_54, %c64] : memref<16x256xf32, #tpu.memory_space<vmem>>, vector<16x32xf32>
    tpu.vector_store %arg7[%c0_54, %c64], %136 {strides = array<i32>} : memref<16x256xf32, #tpu.memory_space<vmem>>, vector<16x32xf32>,
    %c3 = arith.constant 3 : index
    %c0_55 = arith.constant 0 : index
    %c0_56 = arith.constant 0 : index
    %138 = vector.load %arg5[%c3, %c0_55, %c0_56] : memref<11x32x32xf32, #tpu.memory_space<vmem>>, vector<1x32x32xf32>
    %139 = vector.shape_cast %138 : vector<1x32x32xf32> to vector<32x32xf32>
    %cst_57 = arith.constant dense<0.000000e+00> : vector<48x32xf32>
    %140 = tpu.matmul %121, %139, %cst_57 {dimension_numbers = #tpu.dot_dimension_numbers<[1], [0], [0], [1], [0, 0, 1, 1], [], []>} : vector<48x32xf32>, vector<32x32xf32>, vector<48x32xf32> -> vector<48x32xf32>
    %141 = vector.extract_strided_slice %0 {offsets = [3, 0], sizes = [1, 32], strides = [1, 1]} : vector<14x32xf32> to vector<1x32xf32>
    %142 = vector.broadcast %141 : vector<1x32xf32> to vector<48x32xf32>
    %143 = arith.addf %140, %142 : vector<48x32xf32>
    %144 = math.tanh %143 : vector<48x32xf32>
    %cst_58 = arith.constant dense<0.000000e+00> : vector<48x32xf32>
    %145 = tpu.matmul %60, %136, %cst_58 {dimension_numbers = #tpu.dot_dimension_numbers<[1], [0], [0], [1], [0, 0, 1, 1], [], []>} : vector<48x16xf32>, vector<16x32xf32>, vector<48x32xf32> -> vector<48x32xf32>
    %146 = arith.addf %145, %144 : vector<48x32xf32>
    %cst_59 = arith.constant 0.000000e+00 : f32
    %147 = vector.broadcast %cst_59 : f32 to vector<48x32xf32>
    %148 = arith.maximumf %146, %147 : vector<48x32xf32>
    %cst_60 = arith.constant dense<0.000000e+00> : vector<16x32xf32>
    %149 = tpu.matmul %66, %148, %cst_60 {dimension_numbers = #tpu.dot_dimension_numbers<[1], [0], [0], [1], [0, 0, 1, 1], [], []>} : vector<16x48xf32>, vector<48x32xf32>, vector<16x32xf32> -> vector<16x32xf32>
    %cst_61 = arith.constant 1.000000e+00 : f32
    %150 = vector.broadcast %cst_61 : f32 to vector<16x32xf32>
    %151 = arith.mulf %150, %136 : vector<16x32xf32>
    %152 = arith.addf %149, %151 : vector<16x32xf32>
    %c8 = arith.constant 8 : index
    %c0_62 = arith.constant 0 : index
    %c0_63 = arith.constant 0 : index
    %153 = vector.load %arg5[%c8, %c0_62, %c0_63] : memref<11x32x32xf32, #tpu.memory_space<vmem>>, vector<1x32x32xf32>
    %154 = vector.shape_cast %153 : vector<1x32x32xf32> to vector<32x32xf32>
    %cst_64 = arith.constant dense<0.000000e+00> : vector<16x32xf32>
    %155 = tpu.matmul %152, %154, %cst_64 {dimension_numbers = #tpu.dot_dimension_numbers<[1], [0], [0], [1], [0, 0, 1, 1], [], []>} : vector<16x32xf32>, vector<32x32xf32>, vector<16x32xf32> -> vector<16x32xf32>
    %156 = vector.extract_strided_slice %0 {offsets = [8, 0], sizes = [1, 32], strides = [1, 1]} : vector<14x32xf32> to vector<1x32xf32>
    %157 = vector.broadcast %156 : vector<1x32xf32> to vector<16x32xf32>
    %158 = arith.addf %155, %157 : vector<16x32xf32>
    %159 = math.tanh %158 : vector<16x32xf32>
    %c0_65 = arith.constant 0 : index
    %c96 = arith.constant 96 : index
    %160 = vector.load %arg7[%c0_65, %c96] : memref<16x256xf32, #tpu.memory_space<vmem>>, vector<16x32xf32>
    tpu.vector_store %arg7[%c0_65, %c96], %159 {strides = array<i32>} : memref<16x256xf32, #tpu.memory_space<vmem>>, vector<16x32xf32>,
    %c4 = arith.constant 4 : index
    %c0_66 = arith.constant 0 : index
    %c0_67 = arith.constant 0 : index
    %161 = vector.load %arg5[%c4, %c0_66, %c0_67] : memref<11x32x32xf32, #tpu.memory_space<vmem>>, vector<1x32x32xf32>
    %162 = vector.shape_cast %161 : vector<1x32x32xf32> to vector<32x32xf32>
    %cst_68 = arith.constant dense<0.000000e+00> : vector<48x32xf32>
    %163 = tpu.matmul %144, %162, %cst_68 {dimension_numbers = #tpu.dot_dimension_numbers<[1], [0], [0], [1], [0, 0, 1, 1], [], []>} : vector<48x32xf32>, vector<32x32xf32>, vector<48x32xf32> -> vector<48x32xf32>
    %164 = vector.extract_strided_slice %0 {offsets = [4, 0], sizes = [1, 32], strides = [1, 1]} : vector<14x32xf32> to vector<1x32xf32>
    %165 = vector.broadcast %164 : vector<1x32xf32> to vector<48x32xf32>
    %166 = arith.addf %163, %165 : vector<48x32xf32>
    %167 = math.tanh %166 : vector<48x32xf32>
    %cst_69 = arith.constant dense<0.000000e+00> : vector<48x32xf32>
    %168 = tpu.matmul %60, %159, %cst_69 {dimension_numbers = #tpu.dot_dimension_numbers<[1], [0], [0], [1], [0, 0, 1, 1], [], []>} : vector<48x16xf32>, vector<16x32xf32>, vector<48x32xf32> -> vector<48x32xf32>
    %169 = arith.addf %168, %167 : vector<48x32xf32>
    %cst_70 = arith.constant 0.000000e+00 : f32
    %170 = vector.broadcast %cst_70 : f32 to vector<48x32xf32>
    %171 = arith.maximumf %169, %170 : vector<48x32xf32>
    %cst_71 = arith.constant dense<0.000000e+00> : vector<16x32xf32>
    %172 = tpu.matmul %66, %171, %cst_71 {dimension_numbers = #tpu.dot_dimension_numbers<[1], [0], [0], [1], [0, 0, 1, 1], [], []>} : vector<16x48xf32>, vector<48x32xf32>, vector<16x32xf32> -> vector<16x32xf32>
    %cst_72 = arith.constant 1.000000e+00 : f32
    %173 = vector.broadcast %cst_72 : f32 to vector<16x32xf32>
    %174 = arith.mulf %173, %159 : vector<16x32xf32>
    %175 = arith.addf %172, %174 : vector<16x32xf32>
    %c9 = arith.constant 9 : index
    %c0_73 = arith.constant 0 : index
    %c0_74 = arith.constant 0 : index
    %176 = vector.load %arg5[%c9, %c0_73, %c0_74] : memref<11x32x32xf32, #tpu.memory_space<vmem>>, vector<1x32x32xf32>
    %177 = vector.shape_cast %176 : vector<1x32x32xf32> to vector<32x32xf32>
    %cst_75 = arith.constant dense<0.000000e+00> : vector<16x32xf32>
    %178 = tpu.matmul %175, %177, %cst_75 {dimension_numbers = #tpu.dot_dimension_numbers<[1], [0], [0], [1], [0, 0, 1, 1], [], []>} : vector<16x32xf32>, vector<32x32xf32>, vector<16x32xf32> -> vector<16x32xf32>
    %179 = vector.extract_strided_slice %0 {offsets = [9, 0], sizes = [1, 32], strides = [1, 1]} : vector<14x32xf32> to vector<1x32xf32>
    %180 = vector.broadcast %179 : vector<1x32xf32> to vector<16x32xf32>
    %181 = arith.addf %178, %180 : vector<16x32xf32>
    %182 = math.tanh %181 : vector<16x32xf32>
    %c0_76 = arith.constant 0 : index
    %c128 = arith.constant 128 : index
    %183 = vector.load %arg7[%c0_76, %c128] : memref<16x256xf32, #tpu.memory_space<vmem>>, vector<16x32xf32>
    tpu.vector_store %arg7[%c0_76, %c128], %182 {strides = array<i32>} : memref<16x256xf32, #tpu.memory_space<vmem>>, vector<16x32xf32>,
    %c10 = arith.constant 10 : index
    %c0_77 = arith.constant 0 : index
    %c0_78 = arith.constant 0 : index
    %184 = vector.load %arg5[%c10, %c0_77, %c0_78] : memref<11x32x32xf32, #tpu.memory_space<vmem>>, vector<1x32x32xf32>
    %185 = vector.shape_cast %184 : vector<1x32x32xf32> to vector<32x32xf32>
    %cst_79 = arith.constant dense<0.000000e+00> : vector<16x32xf32>
    %186 = tpu.matmul %182, %185, %cst_79 {dimension_numbers = #tpu.dot_dimension_numbers<[1], [0], [0], [1], [0, 0, 1, 1], [], []>} : vector<16x32xf32>, vector<32x32xf32>, vector<16x32xf32> -> vector<16x32xf32>
    %187 = math.tanh %186 : vector<16x32xf32>
    %c0_80 = arith.constant 0 : index
    %c160 = arith.constant 160 : index
    %188 = vector.load %arg7[%c0_80, %c160] : memref<16x256xf32, #tpu.memory_space<vmem>>, vector<16x32xf32>
    tpu.vector_store %arg7[%c0_80, %c160], %187 {strides = array<i32>} : memref<16x256xf32, #tpu.memory_space<vmem>>, vector<16x32xf32>,
    return
  }
  func.func @transform_0(%arg0: i32) -> (i32, i32) {
    %c0_i32 = arith.constant 0 : i32
    %c0_i32_0 = arith.constant 0 : i32
    %c0_i32_1 = arith.constant 0 : i32
    return %c0_i32, %c0_i32_0 : i32, i32
  }
  func.func @transform_1(%arg0: i32) -> (i32, i32) {
    %c0_i32 = arith.constant 0 : i32
    %c0_i32_0 = arith.constant 0 : i32
    %c0_i32_1 = arith.constant 0 : i32
    return %c0_i32, %c0_i32_0 : i32, i32
  }
  func.func @transform_2(%arg0: i32) -> (i32, i32) {
    %c0_i32 = arith.constant 0 : i32
    %c0_i32_0 = arith.constant 0 : i32
    %c0_i32_1 = arith.constant 0 : i32
    return %c0_i32, %c0_i32_0 : i32, i32
  }
  func.func @transform_3(%arg0: i32) -> (i32, i32) {
    %c0_i32 = arith.constant 0 : i32
    %c0_i32_0 = arith.constant 0 : i32
    %c0_i32_1 = arith.constant 0 : i32
    return %c0_i32, %c0_i32_0 : i32, i32
  }
  func.func @transform_4(%arg0: i32) -> (i32, i32, i32) {
    %c0_i32 = arith.constant 0 : i32
    %c0_i32_0 = arith.constant 0 : i32
    %c0_i32_1 = arith.constant 0 : i32
    %c0_i32_2 = arith.constant 0 : i32
    return %c0_i32, %c0_i32_0, %c0_i32_1 : i32, i32, i32
  }
  func.func @transform_5(%arg0: i32) -> (i32, i32) {
    %c0_i32 = arith.constant 0 : i32
    %c0_i32_0 = arith.constant 0 : i32
    %c0_i32_1 = arith.constant 0 : i32
    return %c0_i32, %c0_i32_0 : i32, i32
  }
  func.func @transform_6(%arg0: i32) -> (i32, i32) {
    %c0_i32 = arith.constant 0 : i32
    %c0_i32_0 = arith.constant 0 : i32
    %c0_i32_1 = arith.constant 0 : i32
    return %c0_i32, %c0_i32_0 : i32, i32
  }
}

</mosaic_0001>

<bundles_post_ra>
// kernel: tpu_custom_call.1
= control target key start
LH: loop header
LB: loop body
LE: loop exit
PB: predicated region body
PF: predicated region fallthrough
CT: control target
= control target key end

     0   :  { %11 = vsyncpa [#allocation3], 0  ;;  %s3730_s0 = inlined_call_operand.vmem [shape: f32[16,33], index: 0, kind: input, shape index: {}]   ;;  %s3731_s1 = inlined_call_operand.vmem [shape: f32[48,32], index: 1, kind: input, shape index: {}]   ;;  %s3732_s2 = inlined_call_operand.vmem [shape: s32[48,1], index: 2, kind: input, shape index: {}]   ;;  %s3733_s3 = inlined_call_operand.vmem [shape: s32[1,48], index: 3, kind: input, shape index: {}]   ;;  %s3734_s4 = inlined_call_operand.hbm [shape: f32[11,32,32], index: 4, kind: input, shape index: {}]   ;;  %s3735_s5 = inlined_call_operand.vmem [shape: f32[14,32], index: 5, kind: input, shape index: {}]   ;;  %s3736_s6 = inlined_call_operand.hbm [shape: f32[16,256], index: 6, kind: output, shape index: {}]  }
   0x1   :  { %12 = vsyncpa [#allocation4], 0  ;;  %s3269_s21 = smov [#allocation2]   ;;  %s3221_s25 = scalar_lea.hbm %s3734_s4, 5632 }
   0x2   :  { %s26_s22 = sshll.u32 %s3269_s21, 4  ;;  %p3222_p0 = scmp.ne.s32.totalorder %s3734_s4, %s3221_s25  ;;  %s27_s22 = int_to_ptr.vmem [resolvable:$true] %s26_s22 }
   0x3   :  { %p3225_p1 = scmp.lt.u32.totalorder %s3221_s25, %s3734_s4 }
   0x5   :  { %p3227_p2 = pnand %p3225_p1, %p3222_p0 }
   0x7   :  { %3230 = shalt.err (!%p3227_p2)
}
   0x8   :  { %s3231_s30 = scalar_lea.vmem %s27_s22, 5632  ;;  %p3236_p4 = scmp.lt.s32.totalorder %s27_s22, %s27_s22 }
   0x9   :  { %p3232_p3 = scmp.ne.s32.totalorder %s27_s22, %s3231_s30  ;;  %p3237_p5 = scmp.lt.s32.totalorder %s3231_s30, %s3231_s30 }
   0xb   :  { %p3238_p6 = por %p3237_p5, %p3236_p4 }
   0xd   :  { %p3239_p7 = pnand %p3238_p6, %p3232_p3 }
   0xf   :  { %3242 = shalt.err (!%p3239_p7)
}
  0x10   :  { %s3270_s7 = smov 128   ;;  %s3271_s8 = smov 8  }
  0x11   :  { %32 = dma.hbm_to_vmem [thread:$0]  %s3734_s4, 5632, %s27_s22, [#allocation3], %s3270_s7, %s3270_s7, %s3271_s8  }
  0x12   :  { %3265 = dma.done.wait [#allocation3], 5632  }
  0x13   :  { %3266 = vsyncadd [#allocation3], 4294961664  ;;  %v3272_v0 = vmov 32   ;;  %v3273_v1 = vmov 0   ;;  %v3331_v2 = vld [vmem:[%s3730_s0] sm:$0xff]  ;;  %vm54_vm0 = vcmask 261120  }
  0x14   :  { %3129 = vset.pattern.permute.xlu0 %v3272_v0  ;;  %3130 = vset.pattern.permute.xlu1 %v3273_v1  ;;  %v185_v3 = vld [vmem:[%s3732_s2] sm:$0xff]  ;;  %v3340_v4 = vld [vmem:[%s3730_s0 + $0x8] sm:$0xff]  ;;  %v3358_v8 = vld [vmem:[%s3731_s1 + $0x10] sm:$0xff]  ;;  %vm371_vm1 = vcmask 130048   ;;  %vm491_vm9 = vcmask 392192   ;;  %s3275_s15 = smov 32  }
  0x15   :  { %44 = vperm.xlu0 %3129, %v3331_v2   ;;  %192 = vperm.xlu1 %3130, %v185_v3   ;;  %v186_v5 = vld [vmem:[%s3732_s2 + $0x8] sm:$0xff]  ;;  %v3348_v6 = vld [vmem:[%s3731_s1] sm:$0xff]  ;;  %v3363_v9 = vld [vmem:[%s3731_s1 + $0x18] sm:$0xff]  ;;  %v107_v14 = vsel %vm54_vm0, %v3358_v8, 0.0  ;;  %v125_v17 = vmul.f32 %v3358_v8, %v3358_v8  ;;  %vm1071_vm11 = vcmask 523520   ;;  %s3276_s16 = smov 64  }
  0x16   :  { %v3353_v7 = vld [vmem:[%s3731_s1 + $0x8] sm:$0xff]  ;;  %v104_v10 = vsel %vm54_vm0, %v3348_v6, 0.0  ;;  %v123_v11 = vmul.f32 %v3348_v6, %v3348_v6  ;;  %v3372_v12 = vld [vmem:[%s3731_s1 + $0x20] sm:$0xff]  ;;  %v188_v18 = vld [vmem:[%s3732_s2 + $0x18] sm:$0xff]  ;;  %v109_v20 = vsel %vm54_vm0, %v3363_v9, 0.0  ;;  %v126_v21 = vmul.f32 %v3363_v9, %v3363_v9  ;;  %s3277_s19 = smov 96  }
  0x17   :  { %v105_v13 = vsel %vm54_vm0, %v3353_v7, 0.0  ;;  %v124_v15 = vmul.f32 %v3353_v7, %v3353_v7  ;;  %v3389_v19 = vld [vmem:[%s3731_s1 + $0x28] sm:$0xff]  ;;  %v187_v23 = vld [vmem:[%s3732_s2 + $0x10] sm:$0xff]  ;;  %v127_v25 = vmul.f32 %v3372_v12, %v3372_v12  ;;  %v132_v27 = vsel %vm54_vm0, %v125_v17, 0.0  ;;  %v189_v33 = vld [vmem:[%s3732_s2 + $0x20] sm:$0xff] }
  0x18   :  { %v106_v16 = vadd.f32 %v105_v13, %v104_v10  ;;  %v129_v22 = vsel %vm54_vm0, %v123_v11, 0.0  ;;  %v111_v28 = vsel %vm54_vm0, %v3372_v12, 0.0  ;;  %v128_v31 = vmul.f32 %v3389_v19, %v3389_v19  ;;  %v190_v36 = vld [vmem:[%s3732_s2 + $0x28] sm:$0xff]  ;;  %v244_v56 = vld [vmem:[#allocation2] sm:$0xff]  ;;  %v246_v62 = vld [vmem:[#allocation2 + $0x10] sm:$0xff] }
  0x19   :  { %49 = vperm.xlu0 %3129, %v3340_v4   ;;  %195 = vperm.xlu1 %3130, %v186_v5   ;;  %v130_v26 = vsel %vm54_vm0, %v124_v15, 0.0  ;;  %v134_v32 = vsel %vm54_vm0, %v126_v21, 0.0  ;;  %v113_v34 = vsel %vm54_vm0, %v3389_v19, 0.0  ;;  %v136_v38 = vsel %vm54_vm0, %v127_v25, 0.0  ;;  %v245_v57 = vld [vmem:[#allocation2 + $0x8] sm:$0xff]  ;;  %v247_v63 = vld [vmem:[#allocation2 + $0x18] sm:$0xff] }
  0x1a   :  { %v108_v24 = vadd.f32 %v107_v14, %v106_v16  ;;  %v131_v29 = vadd.f32 %v130_v26, %v129_v22  ;;  %v138_v41 = vsel %vm54_vm0, %v128_v31, 0.0  ;;  %v2949_v59 = vpack.c.bf16 %v245_v57, %v244_v56  ;;  %v3424_v13 = vld [vmem:[%s3735_s5 + $0x8] sm:$0x3f] }
  0x1b   :  { %v2953_v3 = vpack.c.bf16 %v247_v63, %v246_v62  ;;  %vm1478_vm12 = vcmask 785920   ;;  %vm1885_vm13 = vcmask 1048320   ;;  %vm241_vm14 = vcmask 1048064  }
  0x1c   :  { %v110_v30 = vadd.f32 %v109_v20, %v108_v24  ;;  %v133_v35 = vadd.f32 %v132_v27, %v131_v29  ;;  %2950 = vmatprep.subr.bf16.mxu0 %v2949_v59 }
  0x1d   :  { %201 = vperm.xlu1 %3130, %v188_v18   ;;  %3131 = vset.pattern.permute.xlu0 %v3273_v1  ;;  %v86_v1 = vlaneseq }
  0x1e   :  { %198 = vperm.xlu0 %3131, %v187_v23   ;;  %v112_v37 = vadd.f32 %v111_v28, %v110_v30  ;;  %v135_v39 = vadd.f32 %v134_v32, %v133_v35  ;;  %2952 = vmatpush3.bf16.msra.mxu0 %v2949_v59 }
  0x1f   :  { %2954 = vmatprep.subr.bf16.mxu0 %v2953_v3  ;;  %v3418_v10 = vshrl.u32 %v86_v1, 7 }
  0x20   :  { %v114_v40 = vadd.f32 %v113_v34, %v112_v37  ;;  %v137_v42 = vadd.f32 %v136_v38, %v135_v39  ;;  %v3445_v37 = vand.u32 127, %v86_v1 }
  0x21   :  { %204 = vperm.xlu1 %3130, %v189_v33   ;;  %v165_v11 = vsub.s32 4, %v3418_v10  ;;  %v175_v14 = vsub.s32 5, %v3418_v10 }
  0x22   :  { %207 = vperm.xlu0 %3131, %v190_v36   ;;  %v115_v43 = vrot.slane %v114_v40, 4  ;;  %v139_v44 = vadd.f32 %v138_v41, %v137_v42  ;;  %2956 = vmatpush3.bf16.msra.mxu0 %v2953_v3  ;;  %v3274_v41 = vmov 0.0  }
  0x23   :  { %v166_v21 = vrot.slane %v3424_v13, %v165_v11  ;;  %v176_v23 = vrot.slane %v3424_v13, %v175_v14  ;;  %243 = vst.msk [vmem:[#allocation5 + $0x18] sm:$0xff] %vm241_vm14, %v3274_v41  ;;  %242 = vst.msk [vmem:[#allocation5 + $0x8] sm:$0xff] %vm241_vm14, %v3274_v41 }
  0x24   :  { %v116_v45 = vadd.f32 %v115_v43, %v114_v40  ;;  %v140_v46 = vrot.slane %v139_v44, 4 }
  0x26   :  { %v117_v47 = vrot.slane %v116_v45, 2  ;;  %v141_v48 = vadd.f32 %v140_v46, %v139_v44 }
  0x28   :  { %v118_v49 = vadd.f32 %v117_v47, %v116_v45  ;;  %v142_v50 = vrot.slane %v141_v48, 2 }
  0x2a   :  { %v119_v51 = vrot.slane %v118_v49, 1  ;;  %v143_v52 = vadd.f32 %v142_v50, %v141_v48 }
  0x2c   :  { %v120_v53 = vadd.f32 %v119_v51, %v118_v49  ;;  %v144_v54 = vrot.slane %v143_v52, 1 }
  0x2e   :  { %v122_v55 = vmul.f32 0.020833334, %v120_v53  ;;  %v145_v58 = vadd.f32 %v144_v54, %v143_v52 }
  0x30   :  { %v147_v60 = vmul.f32 %v122_v55, %v122_v55  ;;  %v146_v61 = vmul.f32 0.020833334, %v145_v58  ;;  %v149_v15 = vsub.f32 %v3348_v6, %v122_v55  ;;  %v150_v16 = vsub.f32 %v3353_v7, %v122_v55 }
  0x31   :  { %v151_v17 = vsub.f32 %v3358_v8, %v122_v55  ;;  %v152_v18 = vsub.f32 %v3363_v9, %v122_v55  ;;  %v153_v20 = vsub.f32 %v3372_v12, %v122_v55  ;;  %v154_v24 = vsub.f32 %v3389_v19, %v122_v55 }
  0x32   :  { %v148_v0 = vsub.f32 %v146_v61, %v147_v60 }
  0x34   :  { %v155_v5 = vadd.f32 1e-05, %v148_v0 }
  0x36   :  { %3132 = vrsqrt.f32 %v155_v5 }
  0x40   :  { %v3133_v22 = vpop.eup %3132 }
  0x41   :  { %v157_v6 = vmul.f32 %v3133_v22, %v149_v15  ;;  %v158_v25 = vmul.f32 %v3133_v22, %v150_v16  ;;  %v159_v7 = vmul.f32 %v3133_v22, %v151_v17  ;;  %v160_v26 = vmul.f32 %v3133_v22, %v152_v18 }
  0x42   :  { %v161_v8 = vmul.f32 %v3133_v22, %v153_v20  ;;  %v162_v29 = vmul.f32 %v3133_v22, %v154_v24  ;;  %v88_v15 = vsub.s32 2, %v3418_v10  ;;  %v94_v16 = vsub.s32 3, %v3418_v10 }
  0x43   :  { %v167_v27 = vmul.f32 %v166_v21, %v157_v6  ;;  %v168_v9 = vmul.f32 %v166_v21, %v158_v25  ;;  %v169_v28 = vmul.f32 %v166_v21, %v159_v7  ;;  %v170_v12 = vmul.f32 %v166_v21, %v160_v26 }
  0x44   :  { %v171_v33 = vmul.f32 %v166_v21, %v161_v8  ;;  %v172_v19 = vmul.f32 %v166_v21, %v162_v29  ;;  %v89_v21 = vrot.slane %v3424_v13, %v88_v15  ;;  %v95_v6 = vrot.slane %v3424_v13, %v94_v16 }
  0x45   :  { %v177_v30 = vadd.f32 %v176_v23, %v167_v27  ;;  %v178_v31 = vadd.f32 %v176_v23, %v168_v9  ;;  %v179_v32 = vadd.f32 %v176_v23, %v169_v28  ;;  %v180_v34 = vadd.f32 %v176_v23, %v170_v12 }
  0x46   :  { %v181_v35 = vadd.f32 %v176_v23, %v171_v33  ;;  %v182_v36 = vadd.f32 %v176_v23, %v172_v19 }
  0x47   :  { %2666 = vmatprep.mubr.msk.f32.mxu0 %vm54_vm0, %v177_v30 }
  0x48   :  { %2667 = vmatmul.mubr.msk.f32.vlgmr.msra.gmra.mrb[0].mxu0 %vm54_vm0, %v178_v31 }
  0x49   :  { %2669 = vmatprep.mubr.msk.f32.mxu0 %vm54_vm0, %v179_v32 }
  0x4c   :  { %2670 = vmatmul.mubr.msk.f32.gmra.mrb[2].mxu0 %vm54_vm0, %v180_v34 }
  0x4d   :  { %2672 = vmatprep.mubr.msk.f32.mxu0 %vm54_vm0, %v181_v35 }
  0x50   :  { %2673 = vmatmul.mubr.msk.f32.gmra.mrb[4].mxu0 %vm54_vm0, %v182_v36 }
  0x94   :  { %v45_v38 = vpop.permute.xlu0 %44  ;;  %v193_v39 = vpop.permute.xlu1 %192 }
  0x95   :  { %v52_v40 = vmul.f32 %v45_v38, %v3331_v2  ;;  %vm209_vm2 = vcmp.eq.s32.totalorder %v3445_v37, %v193_v39 }
  0x96   :  { %v3450_v42 = vsel %vm209_vm2, 1.0, %v3274_v41 }
  0x97   :  { %2679 = vmatprep.mubr.msk.f32.mxu1 %vm371_vm1, %v3450_v42  ;;  %v66_v44 = vmul.f32 %v52_v40, %v52_v40  ;;  %v55_v46 = vsel %vm54_vm0, %v52_v40, 0.0 }
  0x98   :  { %v50_v43 = vpop.permute.xlu0 %49  ;;  %v196_v18 = vpop.permute.xlu1 %195 }
  0x99   :  { %v53_v45 = vmul.f32 %v50_v43, %v3340_v4  ;;  %v68_v2 = vsel %vm54_vm0, %v66_v44, 0.0  ;;  %vm210_vm4 = vcmp.eq.s32.totalorder %v3445_v37, %v196_v18  ;;  %v574_v43 = vld [vmem:[#allocation2 + $0xa0] sm:$0xff]  ;;  %v575_v44 = vld [vmem:[#allocation2 + $0xa8] sm:$0xff] }
  0x9a   :  { %v3479_v29 = vsel %vm210_vm4, 1.0, %v3274_v41 }
  0x9b   :  { %v56_v47 = vsel %vm54_vm0, %v53_v45, 0.0  ;;  %v67_v48 = vmul.f32 %v53_v45, %v53_v45 }
  0x9c   :  { %v57_v49 = vadd.f32 %v56_v47, %v55_v46  ;;  %v202_v26 = vpop.permute.xlu1 %201  ;;  %v2973_v46 = vpack.c.bf16 %v575_v44, %v574_v43  ;;  %v577_v47 = vld [vmem:[#allocation2 + $0xb8] sm:$0xff] }
  0x9d   :  { %v69_v50 = vsel %vm54_vm0, %v67_v48, 0.0  ;;  %v199_v9 = vpop.permute.xlu0 %198  ;;  %vm212_vm5 = vcmp.eq.s32.totalorder %v3445_v37, %v202_v26 }
  0x9e   :  { %v58_v51 = vrot.slane %v57_v49, 4  ;;  %v70_v52 = vadd.f32 %v69_v50, %v68_v2  ;;  %vm211_vm3 = vcmp.eq.s32.totalorder %v3445_v37, %v199_v9  ;;  %v3488_v31 = vsel %vm212_vm5, 1.0, %v3274_v41  ;;  %2974 = vmatprep.subr.bf16.mxu0 %v2973_v46  ;;  %v3519_v2 = vld [vmem:[%s3735_s5] sm:$0xff] }
  0x9f   :  { %v3476_v13 = vsel %vm211_vm3, 1.0, %v3274_v41  ;;  %2976 = vmatpush3.bf16.msra.mxu0 %v2973_v46 }
  0xa0   :  { %v59_v53 = vadd.f32 %v58_v51, %v57_v49  ;;  %v71_v54 = vrot.slane %v70_v52, 4  ;;  %v205_v12 = vpop.permute.xlu1 %204  ;;  %v250_v49 = vsub.s32 0, %v3418_v10 }
  0xa1   :  { %vm213_vm6 = vcmp.eq.s32.totalorder %v3445_v37, %v205_v12  ;;  %v208_v30 = vpop.permute.xlu0 %207 }
  0xa2   :  { %v60_v55 = vrot.slane %v59_v53, 2  ;;  %v72_v56 = vadd.f32 %v71_v54, %v70_v52  ;;  %v3491_v32 = vsel %vm213_vm6, 1.0, %v3274_v41  ;;  %vm214_vm7 = vcmp.eq.s32.totalorder %v3445_v37, %v208_v30  ;;  %v3506_v37 = vld [vmem:[%s3733_s3] ss:$0 sm:$0xff] }
  0xa3   :  { %v3499_v33 = vsel %vm214_vm7, 1.0, %v3274_v41  ;;  %vm235_vm8 = vcmp.eq.s32.totalorder %v3418_v10, %v3506_v37  ;;  %v251_v50 = vrot.slane %v3519_v2, %v250_v49  ;;  %v668_v30 = vld [vmem:[#allocation2 + $0x20] sm:$0xff] }
  0xa4   :  { %v61_v57 = vadd.f32 %v60_v55, %v59_v53  ;;  %v73_v58 = vrot.slane %v72_v56, 2 }
  0xa6   :  { %v62_v59 = vrot.slane %v61_v57, 1  ;;  %v74_v4 = vadd.f32 %v73_v58, %v72_v56 }
  0xa8   :  { %v63_v60 = vadd.f32 %v62_v59, %v61_v57  ;;  %v75_v61 = vrot.slane %v74_v4, 1 }
  0xaa   :  { %v65_v62 = vmul.f32 0.0625, %v63_v60  ;;  %v76_v63 = vadd.f32 %v75_v61, %v74_v4 }
  0xac   :  { %v77_v0 = vmul.f32 0.0625, %v76_v63  ;;  %v78_v1 = vmul.f32 %v65_v62, %v65_v62  ;;  %v81_v17 = vsub.f32 %v53_v45, %v65_v62  ;;  %v80_v20 = vsub.f32 %v52_v40, %v65_v62  ;;  %v576_v45 = vld [vmem:[#allocation2 + $0xb0] sm:$0xff] }
  0xad   :  { %v3511_v40 = vsel %vm235_vm8, 1.0, %v3274_v41  ;;  %v2977_v48 = vpack.c.bf16 %v577_v47, %v576_v45 }
  0xae   :  { %v79_v3 = vsub.f32 %v77_v0, %v78_v1 }
  0xaf   :  { %2978 = vmatprep.subr.bf16.mxu0 %v2977_v48 }
  0xb0   :  { %v82_v5 = vadd.f32 1e-05, %v79_v3  ;;  %2980 = vmatpush3.bf16.msra.mxu0 %v2977_v48 }
  0xb2   :  { %3134 = vrsqrt.f32 %v82_v5 }
  0xbc   :  { %v3135_v22 = vpop.eup %3134 }
  0xbd   :  { %v85_v23 = vmul.f32 %v3135_v22, %v81_v17  ;;  %v84_v24 = vmul.f32 %v3135_v22, %v80_v20 }
  0xbf   :  { %v90_v25 = vmul.f32 %v89_v21, %v84_v24  ;;  %v91_v7 = vmul.f32 %v89_v21, %v85_v23 }
  0xc1   :  { %v3467_v8 = vadd.f32 %v95_v6, %v90_v25  ;;  %v3469_v27 = vadd.f32 %v95_v6, %v91_v7 }
  0xc3   :  { %v2957_v28 = vpack.c.bf16 %v3469_v27, %v3467_v8 }
  0xc5   :  { %2958 = vmatprep.subr.bf16.mxu1 %v2957_v28 }
  0xc6   :  { %2960 = vmatpush3.bf16.msra.mxu1 %v2957_v28  ;;  %v229_v28 = vadd.s32 8, %v3418_v10 }
  0xc8   :  { %vm236_vm10 = vcmp.eq.s32.totalorder %v229_v28, %v3506_v37 }
  0xc9   :  { %2680 = vmatmul.mubr.msk.f32.vlgmr.msra.gmra.mrb[0].mxu1 %vm371_vm1, %v3479_v29  ;;  %v3527_v43 = vsel %vm236_vm10, 1.0, %v3274_v41 }
  0xca   :  { %2682 = vmatprep.mubr.msk.f32.mxu1 %vm371_vm1, %v3476_v13 }
  0xcd   :  { %2683 = vmatmul.mubr.msk.f32.gmra.mrb[2].mxu1 %vm371_vm1, %v3488_v31 }
  0xce   :  { %2685 = vmatprep.mubr.msk.f32.mxu1 %vm371_vm1, %v3491_v32 }
  0xd1   :  { %2686 = vmatmul.mubr.msk.f32.gmra.mrb[4].mxu1 %vm371_vm1, %v3499_v33 }
  0xd2   :  { %2700 = vmatprep.mubr.msk.f32.mxu1 %vm491_vm9, %v3511_v40 }
 0x11b   :  { %v2668_v34 = vpop.f32.mrb[0].mxu0 }
 0x11c   :  { %v336_v19 = vpop.f32.mrb[1].mxu0  ;;  %v342_v51 = vadd.f32 %v2668_v34, %v251_v50  ;;  %v669_v34 = vld [vmem:[#allocation2 + $0x28] sm:$0xff] }
 0x11d   :  { %v337_v52 = vadd.f32 %v336_v19, %v251_v50 }
 0x11e   :  { %3136 = vtanh.f32 %v342_v51 }
 0x11f   :  { %v2671_v35 = vpop.f32.mrb[2].mxu0  ;;  %3138 = vtanh.f32 %v337_v52 }
 0x120   :  { %v346_v36 = vpop.f32.mrb[3].mxu0  ;;  %v352_v53 = vadd.f32 %v2671_v35, %v251_v50 }
 0x121   :  { %v347_v54 = vadd.f32 %v346_v36, %v251_v50  ;;  %v2981_v36 = vpack.c.bf16 %v669_v34, %v668_v30 }
 0x122   :  { %3140 = vtanh.f32 %v352_v53 }
 0x123   :  { %v2674_v38 = vpop.f32.mrb[4].mxu0  ;;  %3142 = vtanh.f32 %v347_v54 }
 0x124   :  { %v356_v39 = vpop.f32.mrb[5].mxu0  ;;  %v362_v55 = vadd.f32 %v2674_v38, %v251_v50  ;;  %v670_v38 = vld [vmem:[#allocation2 + $0x30] sm:$0xff] }
 0x125   :  { %v357_v56 = vadd.f32 %v356_v39, %v251_v50  ;;  %v671_v39 = vld [vmem:[#allocation2 + $0x38] sm:$0xff] }
 0x126   :  { %3144 = vtanh.f32 %v362_v55  ;;  %v2985_v44 = vpack.c.bf16 %v671_v39, %v670_v38  ;;  %v581_v55 = vrot.slane %v3519_v2, %v175_v14  ;;  %v972_v14 = vld [vmem:[#allocation2 + $0xc0] sm:$0xff] }
 0x127   :  { %3146 = vtanh.f32 %v357_v56 }
 0x128   :  { %v3137_v57 = vpop.eup %3136 }
 0x129   :  { %v3139_v58 = vpop.eup %3138 }
 0x12c   :  { %v3141_v61 = vpop.eup %3140 }
 0x12d   :  { %v3143_v63 = vpop.eup %3142 }
 0x130   :  { %v3145_v18 = vpop.eup %3144 }
 0x131   :  { %v3147_v22 = vpop.eup %3146 }
 0x19c   :  { %v2681_v59 = vpop.f32.mrb[0].mxu1 }
 0x19d   :  { %v462_v4 = vadd.f32 %v3137_v57, %v2681_v59  ;;  %v456_v60 = vpop.f32.mrb[1].mxu1 }
 0x19e   :  { %v457_v62 = vadd.f32 %v3139_v58, %v456_v60  ;;  %v973_v60 = vld [vmem:[#allocation2 + $0xc8] sm:$0xff] }
 0x19f   :  { %v486_v0 = vmax.f32 %v462_v4, 0.0 }
 0x1a0   :  { %v485_v1 = vmax.f32 %v457_v62, 0.0  ;;  %v2684_v3 = vpop.f32.mrb[2].mxu1  ;;  %v3005_v62 = vpack.c.bf16 %v973_v60, %v972_v14 }
 0x1a1   :  { %v472_v5 = vadd.f32 %v3141_v61, %v2684_v3  ;;  %v466_v17 = vpop.f32.mrb[3].mxu1 }
 0x1a2   :  { %v2961_v20 = vpack.c.bf16 %v486_v0, %v485_v1  ;;  %v467_v21 = vadd.f32 %v3143_v63, %v466_v17  ;;  %v674_v1 = vsub.s32 1, %v3418_v10 }
 0x1a3   :  { %v488_v23 = vmax.f32 %v472_v5, 0.0 }
 0x1a4   :  { %v487_v24 = vmax.f32 %v467_v21, 0.0  ;;  %v2687_v6 = vpop.f32.mrb[4].mxu1  ;;  %2962 = vmatprep.subr.bf16.mxu1 %v2961_v20  ;;  %v675_v3 = vrot.slane %v3519_v2, %v674_v1 }
 0x1a5   :  { %v482_v25 = vadd.f32 %v3145_v18, %v2687_v6  ;;  %v476_v7 = vpop.f32.mrb[5].mxu1  ;;  %2964 = vmatpush3.bf16.msra.mxu1 %v2961_v20 }
 0x1a6   :  { %v2965_v26 = vpack.c.bf16 %v488_v23, %v487_v24  ;;  %v477_v9 = vadd.f32 %v3147_v22, %v476_v7 }
 0x1a7   :  { %v490_v12 = vmax.f32 %v482_v25, 0.0 }
 0x1a8   :  { %v489_v19 = vmax.f32 %v477_v9, 0.0  ;;  %2966 = vmatprep.subr.bf16.mxu1 %v2965_v26 }
 0x1a9   :  { %2968 = vmatpush3.bf16.msra.mxu1 %v2965_v26 }
 0x1aa   :  { %v2969_v35 = vpack.c.bf16 %v490_v12, %v489_v19 }
 0x1ac   :  { %2970 = vmatprep.subr.bf16.mxu1 %v2969_v35 }
 0x1ad   :  { %2972 = vmatpush3.bf16.msra.mxu1 %v2969_v35 }
 0x1ae   :  { %2982 = vmatprep.subr.bf16.mxu1 %v2981_v36 }
 0x1b0   :  { %2701 = vmatmul.mubr.msk.f32.vlgmr.msra.gmra.mrb[6].mxu1 %vm491_vm9, %v3527_v43 }
 0x1b1   :  { %2984 = vmatpush3.bf16.msra.mxu1 %v2981_v36  ;;  %2722 = vmatprep.mubr.msk.f32.mxu1 %vm54_vm0, %v3139_v58 }
 0x1b2   :  { %2986 = vmatprep.subr.bf16.mxu1 %v2985_v44 }
 0x1b5   :  { %2988 = vmatpush3.bf16.msra.mxu1 %v2985_v44 }
 0x1b6   :  { %3006 = vmatprep.subr.bf16.mxu1 %v3005_v62 }
 0x1b8   :  { %2723 = vmatmul.mubr.msk.f32.vlgmr.msra.gmra.mrb[8].mxu1 %vm54_vm0, %v3137_v57 }
 0x1b9   :  { %2725 = vmatprep.mubr.msk.f32.mxu1 %vm54_vm0, %v3143_v63  ;;  %v975_v63 = vld [vmem:[#allocation2 + $0xd8] sm:$0xff]  ;;  %3008 = vmatpush3.bf16.msra.mxu1 %v3005_v62 }
 0x1bc   :  { %2726 = vmatmul.mubr.msk.f32.gmra.mrb[10].mxu1 %vm54_vm0, %v3141_v61  ;;  %v974_v61 = vld [vmem:[#allocation2 + $0xd0] sm:$0xff] }
 0x1bd   :  { %2728 = vmatprep.mubr.msk.f32.mxu1 %vm54_vm0, %v3147_v22  ;;  %v3009_v0 = vpack.c.bf16 %v975_v63, %v974_v61  ;;  %v1082_v63 = vrot.slane %v3519_v2, %v88_v15 }
 0x1bf   :  { %3010 = vmatprep.subr.bf16.mxu1 %v3009_v0 }
 0x1c0   :  { %2729 = vmatmul.mubr.msk.f32.gmra.mrb[12].mxu1 %vm54_vm0, %v3145_v18 }
 0x1c1   :  { %3012 = vmatpush3.bf16.msra.mxu1 %v3009_v0 }
 0x283   :  { %v2702_v37 = vpop.f32.mrb[6].mxu1 }
 0x284   :  { %v564_v45 = vpop.f32.mrb[7].mxu1  ;;  %v570_v47 = vadd.f32 %v2702_v37, %v3469_v27 }
 0x285   :  { %v565_v46 = vadd.f32 %v564_v45, %v3467_v8 }
 0x287   :  { %2711 = vmatprep.mubr.msk.f32.mxu0 %vm54_vm0, %v565_v46 }
 0x288   :  { %2712 = vmatmul.mubr.msk.f32.vlgmr.msra.gmra.mrb[6].mxu0 %vm54_vm0, %v570_v47 }
 0x289   :  { %2735 = vmatprep.mubr.msk.f32.mxu0 %vm371_vm1, %v3450_v42 }
 0x28b   :  { %v2724_v48 = vpop.f32.mrb[8].mxu1 }
 0x28c   :  { %v760_v50 = vpop.f32.mrb[9].mxu1  ;;  %v766_v5 = vadd.f32 %v2724_v48, %v675_v3 }
 0x28d   :  { %v761_v17 = vadd.f32 %v760_v50, %v675_v3 }
 0x28f   :  { %v2727_v51 = vpop.f32.mrb[10].mxu1 }
 0x290   :  { %v770_v52 = vpop.f32.mrb[11].mxu1  ;;  %v776_v18 = vadd.f32 %v2727_v51, %v675_v3 }
 0x291   :  { %v771_v20 = vadd.f32 %v770_v52, %v675_v3 }
 0x293   :  { %v2730_v53 = vpop.f32.mrb[12].mxu1 }
 0x294   :  { %v780_v54 = vpop.f32.mrb[13].mxu1  ;;  %v786_v21 = vadd.f32 %v2730_v53, %v675_v3  ;;  %v1075_v53 = vld [vmem:[#allocation2 + $0x40] sm:$0xff] }
 0x295   :  { %v781_v22 = vadd.f32 %v780_v54, %v675_v3  ;;  %v1076_v54 = vld [vmem:[#allocation2 + $0x48] sm:$0xff] }
 0x35b   :  { %v2713_v8 = vpop.f32.mrb[6].mxu0 }
 0x35c   :  { %v660_v56 = vadd.f32 %v2713_v8, %v581_v55  ;;  %v654_v27 = vpop.f32.mrb[7].mxu0 }
 0x35d   :  { %v655_v57 = vadd.f32 %v654_v27, %v581_v55  ;;  %v1077_v27 = vld [vmem:[#allocation2 + $0x50] sm:$0xff] }
 0x35e   :  { %3148 = vtanh.f32 %v660_v56  ;;  %v3013_v56 = vpack.c.bf16 %v1076_v54, %v1075_v53 }
 0x35f   :  { %3150 = vtanh.f32 %v655_v57  ;;  %v1078_v57 = vld [vmem:[#allocation2 + $0x58] sm:$0xff] }
 0x360   :  { %3152 = vtanh.f32 %v766_v5 }
 0x361   :  { %3154 = vtanh.f32 %v761_v17 }
 0x362   :  { %3156 = vtanh.f32 %v776_v18 }
 0x363   :  { %3158 = vtanh.f32 %v771_v20 }
 0x364   :  { %3160 = vtanh.f32 %v786_v21 }
 0x365   :  { %3162 = vtanh.f32 %v781_v22 }
 0x368   :  { %v3546_v58 = vpop.eup %3148 }
 0x369   :  { %v3548_v59 = vpop.eup %3150  ;;  %666 = vst.msk [vmem:[#allocation5 + $0x10] sm:$0xff] %vm54_vm0, %v3546_v58 }
 0x36a   :  { %665 = vst.msk [vmem:[#allocation5] sm:$0xff] %vm54_vm0, %v3548_v59  ;;  %v2989_v4 = vpack.c.bf16 %v3546_v58, %v3548_v59  ;;  %v3153_v23 = vpop.eup %3152 }
 0x36b   :  { %v3155_v6 = vpop.eup %3154 }
 0x36c   :  { %2990 = vmatprep.subr.bf16.mxu0 %v2989_v4  ;;  %v3157_v28 = vpop.eup %3156 }
 0x36d   :  { %2992 = vmatpush3.bf16.msra.mxu0 %v2989_v4  ;;  %v3159_v34 = vpop.eup %3158  ;;  %v3017_v4 = vpack.c.bf16 %v1078_v57, %v1077_v27 }
 0x36e   :  { %v3161_v44 = vpop.eup %3160 }
 0x36f   :  { %v3163_v46 = vpop.eup %3162 }
 0x370   :  { %2736 = vmatmul.mubr.msk.f32.vlgmr.msra.gmra.mrb[8].mxu0 %vm371_vm1, %v3479_v29 }
 0x371   :  { %2738 = vmatprep.mubr.msk.f32.mxu0 %vm371_vm1, %v3476_v13 }
 0x374   :  { %2739 = vmatmul.mubr.msk.f32.gmra.mrb[10].mxu0 %vm371_vm1, %v3488_v31 }
 0x375   :  { %2741 = vmatprep.mubr.msk.f32.mxu0 %vm371_vm1, %v3491_v32 }
 0x378   :  { %2742 = vmatmul.mubr.msk.f32.gmra.mrb[12].mxu0 %vm371_vm1, %v3499_v33 }
 0x379   :  { %2756 = vmatprep.mubr.msk.f32.mxu0 %vm491_vm9, %v3511_v40 }
 0x443   :  { %v2737_v24 = vpop.f32.mrb[8].mxu0 }
 0x444   :  { %v867_v25 = vadd.f32 %v3153_v23, %v2737_v24  ;;  %v861_v7 = vpop.f32.mrb[9].mxu0 }
 0x445   :  { %v862_v26 = vadd.f32 %v3155_v6, %v861_v7 }
 0x446   :  { %v891_v9 = vmax.f32 %v867_v25, 0.0 }
 0x447   :  { %v890_v12 = vmax.f32 %v862_v26, 0.0  ;;  %v2740_v30 = vpop.f32.mrb[10].mxu0 }
 0x448   :  { %v877_v19 = vadd.f32 %v3157_v28, %v2740_v30  ;;  %v871_v35 = vpop.f32.mrb[11].mxu0 }
 0x449   :  { %v2993_v36 = vpack.c.bf16 %v891_v9, %v890_v12  ;;  %v872_v38 = vadd.f32 %v3159_v34, %v871_v35  ;;  %v1379_v35 = vld [vmem:[#allocation2 + $0xe0] sm:$0xff] }
 0x44a   :  { %v893_v39 = vmax.f32 %v877_v19, 0.0 }
 0x44b   :  { %v892_v37 = vmax.f32 %v872_v38, 0.0  ;;  %v2743_v45 = vpop.f32.mrb[12].mxu0  ;;  %2994 = vmatprep.subr.bf16.mxu0 %v2993_v36  ;;  %v1381_v38 = vld [vmem:[#allocation2 + $0xf0] sm:$0xff] }
 0x44c   :  { %v887_v47 = vadd.f32 %v3161_v44, %v2743_v45  ;;  %v881_v48 = vpop.f32.mrb[13].mxu0  ;;  %2996 = vmatpush3.bf16.msra.mxu0 %v2993_v36  ;;  %v1380_v36 = vld [vmem:[#allocation2 + $0xe8] sm:$0xff] }
 0x44d   :  { %v2997_v50 = vpack.c.bf16 %v893_v39, %v892_v37  ;;  %v882_v51 = vadd.f32 %v3163_v46, %v881_v48  ;;  %v3037_v39 = vpack.c.bf16 %v1380_v36, %v1379_v35 }
 0x44e   :  { %v895_v52 = vmax.f32 %v887_v47, 0.0 }
 0x44f   :  { %v894_v55 = vmax.f32 %v882_v51, 0.0  ;;  %2998 = vmatprep.subr.bf16.mxu0 %v2997_v50 }
 0x450   :  { %3000 = vmatpush3.bf16.msra.mxu0 %v2997_v50 }
 0x451   :  { %v3001_v8 = vpack.c.bf16 %v895_v52, %v894_v55 }
 0x453   :  { %3002 = vmatprep.subr.bf16.mxu0 %v3001_v8 }
 0x454   :  { %3004 = vmatpush3.bf16.msra.mxu0 %v3001_v8 }
 0x455   :  { %3014 = vmatprep.subr.bf16.mxu0 %v3013_v56 }
 0x457   :  { %2757 = vmatmul.mubr.msk.f32.vlgmr.msra.gmra.mrb[14].mxu0 %vm491_vm9, %v3527_v43 }
 0x458   :  { %3016 = vmatpush3.bf16.msra.mxu0 %v3013_v56  ;;  %2778 = vmatprep.mubr.msk.f32.mxu0 %vm54_vm0, %v3155_v6  ;;  %v978_v6 = vsub.s32 6, %v3418_v10 }
 0x459   :  { %3018 = vmatprep.subr.bf16.mxu0 %v3017_v4 }
 0x45a   :  { %v979_v15 = vrot.slane %v3519_v2, %v978_v6 }
 0x45c   :  { %3020 = vmatpush3.bf16.msra.mxu0 %v3017_v4 }
 0x45d   :  { %3038 = vmatprep.subr.bf16.mxu0 %v3037_v39 }
 0x45f   :  { %2779 = vmatmul.mubr.msk.f32.vlgmr.msra.gmra.mrb[16].mxu0 %vm54_vm0, %v3153_v23 }
 0x460   :  { %2781 = vmatprep.mubr.msk.f32.mxu0 %vm54_vm0, %v3159_v34  ;;  %3040 = vmatpush3.bf16.msra.mxu0 %v3037_v39 }
 0x463   :  { %2782 = vmatmul.mubr.msk.f32.gmra.mrb[18].mxu0 %vm54_vm0, %v3157_v28 }
 0x464   :  { %2784 = vmatprep.mubr.msk.f32.mxu0 %vm54_vm0, %v3163_v46 }
 0x467   :  { %2785 = vmatmul.mubr.msk.f32.gmra.mrb[20].mxu0 %vm54_vm0, %v3161_v44  ;;  %v1382_v44 = vld [vmem:[#allocation2 + $0xf8] sm:$0xff] }
 0x468   :  { %v3041_v37 = vpack.c.bf16 %v1382_v44, %v1381_v38 }
 0x46a   :  { %3042 = vmatprep.subr.bf16.mxu0 %v3041_v37 }
 0x46b   :  { %3044 = vmatpush3.bf16.msra.mxu0 %v3041_v37 }
 0x52a   :  { %v2758_v14 = vpop.f32.mrb[14].mxu0 }
 0x52b   :  { %v962_v60 = vpop.f32.mrb[15].mxu0  ;;  %v968_v62 = vadd.f32 %v3546_v58, %v2758_v14 }
 0x52c   :  { %v963_v61 = vadd.f32 %v3548_v59, %v962_v60 }
 0x52e   :  { %2767 = vmatprep.mubr.msk.f32.mxu1 %vm54_vm0, %v963_v61 }
 0x52f   :  { %2768 = vmatmul.mubr.msk.f32.vlgmr.msra.gmra.mrb[14].mxu1 %vm54_vm0, %v968_v62 }
 0x530   :  { %2791 = vmatprep.mubr.msk.f32.mxu1 %vm371_vm1, %v3450_v42 }
 0x532   :  { %v2780_v0 = vpop.f32.mrb[16].mxu0 }
 0x533   :  { %v1173_v3 = vadd.f32 %v2780_v0, %v1082_v63  ;;  %v1167_v5 = vpop.f32.mrb[17].mxu0 }
 0x534   :  { %v1168_v17 = vadd.f32 %v1167_v5, %v1082_v63 }
 0x536   :  { %v2783_v18 = vpop.f32.mrb[18].mxu0 }
 0x537   :  { %v1183_v20 = vadd.f32 %v2783_v18, %v1082_v63  ;;  %v1177_v59 = vpop.f32.mrb[19].mxu0 }
 0x538   :  { %v1178_v21 = vadd.f32 %v1177_v59, %v1082_v63  ;;  %v1483_v59 = vld [vmem:[#allocation2 + $0x68] sm:$0xff] }
 0x53a   :  { %v2786_v58 = vpop.f32.mrb[20].mxu0 }
 0x53b   :  { %v1193_v22 = vadd.f32 %v2786_v58, %v1082_v63  ;;  %v1187_v23 = vpop.f32.mrb[21].mxu0 }
 0x53c   :  { %v1188_v24 = vadd.f32 %v1187_v23, %v1082_v63  ;;  %v1484_v23 = vld [vmem:[#allocation2 + $0x70] sm:$0xff] }
 0x602   :  { %v2769_v25 = vpop.f32.mrb[14].mxu1 }
 0x603   :  { %v1058_v7 = vadd.f32 %v2769_v25, %v979_v15  ;;  %v1052_v26 = vpop.f32.mrb[15].mxu1 }
 0x604   :  { %v1053_v9 = vadd.f32 %v1052_v26, %v979_v15 }
 0x605   :  { %3164 = vtanh.f32 %v1058_v7 }
 0x606   :  { %3166 = vtanh.f32 %v1053_v9  ;;  %v1489_v9 = vrot.slane %v3519_v2, %v94_v16 }
 0x607   :  { %3168 = vtanh.f32 %v1173_v3 }
 0x608   :  { %3170 = vtanh.f32 %v1168_v17 }
 0x609   :  { %3172 = vtanh.f32 %v1183_v20  ;;  %v1482_v20 = vld [vmem:[#allocation2 + $0x60] sm:$0xff] }
 0x60a   :  { %3174 = vtanh.f32 %v1178_v21 }
 0x60b   :  { %3176 = vtanh.f32 %v1193_v22  ;;  %v3045_v22 = vpack.c.bf16 %v1483_v59, %v1482_v20 }
 0x60c   :  { %3178 = vtanh.f32 %v1188_v24  ;;  %v1485_v24 = vld [vmem:[#allocation2 + $0x78] sm:$0xff] }
 0x60d   :  { %v3049_v6 = vpack.c.bf16 %v1485_v24, %v1484_v23 }
 0x60f   :  { %v3591_v28 = vpop.eup %3164 }
 0x610   :  { %v3593_v12 = vpop.eup %3166  ;;  %1067 = vrot.lane.b32.xlu0 %v3591_v28, %s3275_s15 }
 0x611   :  { %1065 = vrot.lane.b32.xlu1 %v3593_v12, %s3275_s15  ;;  %v3021_v30 = vpack.c.bf16 %v3591_v28, %v3593_v12  ;;  %v3169_v45 = vpop.eup %3168 }
 0x612   :  { %v3171_v47 = vpop.eup %3170 }
 0x613   :  { %3022 = vmatprep.subr.bf16.mxu1 %v3021_v30  ;;  %v3173_v53 = vpop.eup %3172 }
 0x614   :  { %3024 = vmatpush3.bf16.msra.mxu1 %v3021_v30  ;;  %v3175_v8 = vpop.eup %3174 }
 0x615   :  { %v3177_v60 = vpop.eup %3176 }
 0x616   :  { %v3179_v63 = vpop.eup %3178 }
 0x617   :  { %2792 = vmatmul.mubr.msk.f32.vlgmr.msra.gmra.mrb[16].mxu1 %vm371_vm1, %v3479_v29 }
 0x618   :  { %2794 = vmatprep.mubr.msk.f32.mxu1 %vm371_vm1, %v3476_v13 }
 0x61b   :  { %2795 = vmatmul.mubr.msk.f32.gmra.mrb[18].mxu1 %vm371_vm1, %v3488_v31 }
 0x61c   :  { %2797 = vmatprep.mubr.msk.f32.mxu1 %vm371_vm1, %v3491_v32 }
 0x61f   :  { %2798 = vmatmul.mubr.msk.f32.gmra.mrb[20].mxu1 %vm371_vm1, %v3499_v33 }
 0x620   :  { %2812 = vmatprep.mubr.msk.f32.mxu1 %vm491_vm9, %v3511_v40 }
 0x682   :  { %v1068_v34 = vpop.permute.xlu0 %1067 }
 0x683   :  { %1073 = vst.msk [vmem:[#allocation5 + $0x10] sm:$0xff] %vm1071_vm11, %v1068_v34  ;;  %v1066_v19 = vpop.permute.xlu1 %1065 }
 0x684   :  { %1072 = vst.msk [vmem:[#allocation5] sm:$0xff] %vm1071_vm11, %v1066_v19 }
 0x6ea   :  { %v2793_v46 = vpop.f32.mrb[16].mxu1 }
 0x6eb   :  { %v1274_v48 = vadd.f32 %v3169_v45, %v2793_v46  ;;  %v1268_v50 = vpop.f32.mrb[17].mxu1  ;;  %v1385_v46 = vsub.s32 7, %v3418_v10 }
 0x6ec   :  { %v1269_v51 = vadd.f32 %v3171_v47, %v1268_v50 }
 0x6ed   :  { %v1298_v52 = vmax.f32 %v1274_v48, 0.0  ;;  %v1386_v16 = vrot.slane %v3519_v2, %v1385_v46 }
 0x6ee   :  { %v1297_v54 = vmax.f32 %v1269_v51, 0.0  ;;  %v2796_v55 = vpop.f32.mrb[18].mxu1 }
 0x6ef   :  { %v1284_v56 = vadd.f32 %v3173_v53, %v2796_v55  ;;  %v1278_v27 = vpop.f32.mrb[19].mxu1 }
 0x6f0   :  { %v3025_v57 = vpack.c.bf16 %v1298_v52, %v1297_v54  ;;  %v1279_v4 = vadd.f32 %v3175_v8, %v1278_v27  ;;  %v1787_v27 = vld [vmem:[#allocation2 + $0x108] sm:$0xff] }
 0x6f1   :  { %v1300_v14 = vmax.f32 %v1284_v56, 0.0  ;;  %v1786_v56 = vld [vmem:[#allocation2 + $0x100] sm:$0xff] }
 0x6f2   :  { %v1299_v61 = vmax.f32 %v1279_v4, 0.0  ;;  %v2799_v62 = vpop.f32.mrb[20].mxu1  ;;  %3026 = vmatprep.subr.bf16.mxu1 %v3025_v57  ;;  %v3069_v4 = vpack.c.bf16 %v1787_v27, %v1786_v56  ;;  %v3671_v27 = vld [vmem:[%s3735_s5 + $0x8] sm:$0x3f]  ;;  %s3278_s5 = smov [#allocation5]  }
 0x6f3   :  { %v1294_v0 = vadd.f32 %v3177_v60, %v2799_v62  ;;  %v1288_v3 = vpop.f32.mrb[21].mxu1  ;;  %3028 = vmatpush3.bf16.msra.mxu1 %v3025_v57  ;;  %v1788_v57 = vld [vmem:[#allocation2 + $0x110] sm:$0xff]  ;;  %s2389_s20 = sshll.u32 %s3278_s5, 4  ;;  %s2390_s20 = int_to_ptr.vmem [resolvable:$true] %s2389_s20 }
 0x6f4   :  { %v3029_v5 = vpack.c.bf16 %v1300_v14, %v1299_v61  ;;  %v1289_v17 = vadd.f32 %v3179_v63, %v1288_v3  ;;  %v1789_v14 = vld [vmem:[#allocation2 + $0x118] sm:$0xff]  ;;  %s3243_s21 = scalar_lea.vmem %s2390_s20, 512  ;;  %p3248_p9 = scmp.lt.s32.totalorder %s2390_s20, %s2390_s20 }
 0x6f5   :  { %v1302_v18 = vmax.f32 %v1294_v0, 0.0  ;;  %p3244_p8 = scmp.ne.s32.totalorder %s2390_s20, %s3243_s21  ;;  %p3249_p10 = scmp.lt.s32.totalorder %s3243_s21, %s3243_s21 }
 0x6f6   :  { %v1301_v21 = vmax.f32 %v1289_v17, 0.0  ;;  %3030 = vmatprep.subr.bf16.mxu1 %v3029_v5 }
 0x6f7   :  { %3032 = vmatpush3.bf16.msra.mxu1 %v3029_v5  ;;  %p3250_p11 = por %p3249_p10, %p3248_p9 }
 0x6f8   :  { %v3033_v58 = vpack.c.bf16 %v1302_v18, %v1301_v21 }
 0x6f9   :  { %p3251_p12 = pnand %p3250_p11, %p3244_p8 }
 0x6fa   :  { %3034 = vmatprep.subr.bf16.mxu1 %v3033_v58 }
 0x6fb   :  { %3036 = vmatpush3.bf16.msra.mxu1 %v3033_v58 }
 0x6fc   :  { %3046 = vmatprep.subr.bf16.mxu1 %v3045_v22 }
 0x6fe   :  { %2813 = vmatmul.mubr.msk.f32.vlgmr.msra.gmra.mrb[22].mxu1 %vm491_vm9, %v3527_v43 }
 0x6ff   :  { %3048 = vmatpush3.bf16.msra.mxu1 %v3045_v22  ;;  %2834 = vmatprep.mubr.msk.f32.mxu1 %vm54_vm0, %v3171_v47 }
 0x700   :  { %3050 = vmatprep.subr.bf16.mxu1 %v3049_v6 }
 0x703   :  { %3052 = vmatpush3.bf16.msra.mxu1 %v3049_v6 }
 0x704   :  { %3070 = vmatprep.subr.bf16.mxu1 %v3069_v4 }
 0x706   :  { %2835 = vmatmul.mubr.msk.f32.vlgmr.msra.gmra.mrb[24].mxu1 %vm54_vm0, %v3169_v45 }
 0x707   :  { %2837 = vmatprep.mubr.msk.f32.mxu1 %vm54_vm0, %v3175_v8  ;;  %3072 = vmatpush3.bf16.msra.mxu1 %v3069_v4 }
 0x70a   :  { %2838 = vmatmul.mubr.msk.f32.gmra.mrb[26].mxu1 %vm54_vm0, %v3173_v53 }
 0x70b   :  { %2840 = vmatprep.mubr.msk.f32.mxu1 %vm54_vm0, %v3179_v63 }
 0x70e   :  { %2841 = vmatmul.mubr.msk.f32.gmra.mrb[28].mxu1 %vm54_vm0, %v3177_v60  ;;  %v3073_v60 = vpack.c.bf16 %v1789_v14, %v1788_v57 }
 0x710   :  { %3074 = vmatprep.subr.bf16.mxu1 %v3073_v60 }
 0x711   :  { %3076 = vmatpush3.bf16.msra.mxu1 %v3073_v60 }
 0x7d1   :  { %v2814_v15 = vpop.f32.mrb[22].mxu1 }
 0x7d2   :  { %v1369_v25 = vpop.f32.mrb[23].mxu1  ;;  %v1375_v26 = vadd.f32 %v3591_v28, %v2814_v15 }
 0x7d3   :  { %v1370_v7 = vadd.f32 %v3593_v12, %v1369_v25 }
 0x7d5   :  { %2823 = vmatprep.mubr.msk.f32.mxu0 %vm54_vm0, %v1370_v7 }
 0x7d6   :  { %2824 = vmatmul.mubr.msk.f32.vlgmr.msra.gmra.mrb[22].mxu0 %vm54_vm0, %v1375_v26 }
 0x7d7   :  { %2847 = vmatprep.mubr.msk.f32.mxu0 %vm371_vm1, %v3450_v42 }
 0x7d9   :  { %v2836_v30 = vpop.f32.mrb[24].mxu1 }
 0x7da   :  { %v1580_v34 = vadd.f32 %v2836_v30, %v1489_v9  ;;  %v1574_v19 = vpop.f32.mrb[25].mxu1 }
 0x7db   :  { %v1575_v35 = vadd.f32 %v1574_v19, %v1489_v9 }
 0x7dd   :  { %v2839_v36 = vpop.f32.mrb[26].mxu1 }
 0x7de   :  { %v1590_v38 = vadd.f32 %v2839_v36, %v1489_v9  ;;  %v1584_v12 = vpop.f32.mrb[27].mxu1  ;;  %v1889_v36 = vld [vmem:[#allocation2 + $0x80] sm:$0xff] }
 0x7df   :  { %v1585_v39 = vadd.f32 %v1584_v12, %v1489_v9 }
 0x7e1   :  { %v2842_v28 = vpop.f32.mrb[28].mxu1 }
 0x7e2   :  { %v1600_v44 = vadd.f32 %v2842_v28, %v1489_v9  ;;  %v1594_v37 = vpop.f32.mrb[29].mxu1 }
 0x7e3   :  { %v1595_v45 = vadd.f32 %v1594_v37, %v1489_v9  ;;  %v1892_v37 = vld [vmem:[#allocation2 + $0x98] sm:$0xff] }
 0x8a9   :  { %v2825_v47 = vpop.f32.mrb[22].mxu0 }
 0x8aa   :  { %v1465_v48 = vadd.f32 %v2825_v47, %v1386_v16  ;;  %v1459_v50 = vpop.f32.mrb[23].mxu0 }
 0x8ab   :  { %v1460_v51 = vadd.f32 %v1459_v50, %v1386_v16 }
 0x8ac   :  { %3180 = vtanh.f32 %v1465_v48 }
 0x8ad   :  { %3182 = vtanh.f32 %v1460_v51 }
 0x8ae   :  { %3184 = vtanh.f32 %v1580_v34 }
 0x8af   :  { %3186 = vtanh.f32 %v1575_v35 }
 0x8b0   :  { %3188 = vtanh.f32 %v1590_v38  ;;  %v1890_v38 = vld [vmem:[#allocation2 + $0x88] sm:$0xff] }
 0x8b1   :  { %3190 = vtanh.f32 %v1585_v39  ;;  %v3077_v28 = vpack.c.bf16 %v1890_v38, %v1889_v36 }
 0x8b2   :  { %3192 = vtanh.f32 %v1600_v44  ;;  %v1891_v44 = vld [vmem:[#allocation2 + $0x90] sm:$0xff] }
 0x8b3   :  { %3194 = vtanh.f32 %v1595_v45  ;;  %v3081_v45 = vpack.c.bf16 %v1892_v37, %v1891_v44 }
 0x8b6   :  { %v3634_v52 = vpop.eup %3180 }
 0x8b7   :  { %v3636_v53 = vpop.eup %3182  ;;  %1474 = vrot.lane.b32.xlu0 %v3634_v52, %s3276_s16 }
 0x8b8   :  { %1472 = vrot.lane.b32.xlu1 %v3636_v53, %s3276_s16  ;;  %v3053_v54 = vpack.c.bf16 %v3634_v52, %v3636_v53  ;;  %v3185_v61 = vpop.eup %3184 }
 0x8b9   :  { %v3187_v63 = vpop.eup %3186 }
 0x8ba   :  { %3054 = vmatprep.subr.bf16.mxu0 %v3053_v54  ;;  %v3189_v18 = vpop.eup %3188 }
 0x8bb   :  { %3056 = vmatpush3.bf16.msra.mxu0 %v3053_v54  ;;  %v3191_v21 = vpop.eup %3190 }
 0x8bc   :  { %v3193_v15 = vpop.eup %3192 }
 0x8bd   :  { %v3195_v26 = vpop.eup %3194 }
 0x8be   :  { %2848 = vmatmul.mubr.msk.f32.vlgmr.msra.gmra.mrb[24].mxu0 %vm371_vm1, %v3479_v29 }
 0x8bf   :  { %2850 = vmatprep.mubr.msk.f32.mxu0 %vm371_vm1, %v3476_v13 }
 0x8c2   :  { %2851 = vmatmul.mubr.msk.f32.gmra.mrb[26].mxu0 %vm371_vm1, %v3488_v31 }
 0x8c3   :  { %2853 = vmatprep.mubr.msk.f32.mxu0 %vm371_vm1, %v3491_v32 }
 0x8c6   :  { %2854 = vmatmul.mubr.msk.f32.gmra.mrb[28].mxu0 %vm371_vm1, %v3499_v33 }
 0x8c7   :  { %2868 = vmatprep.mubr.msk.f32.mxu0 %vm491_vm9, %v3511_v40 }
 0x929   :  { %v1475_v55 = vpop.permute.xlu0 %1474 }
 0x92a   :  { %1480 = vst.msk [vmem:[#allocation5 + $0x10] sm:$0xff] %vm1478_vm12, %v1475_v55  ;;  %v1473_v8 = vpop.permute.xlu1 %1472 }
 0x92b   :  { %1479 = vst.msk [vmem:[#allocation5] sm:$0xff] %vm1478_vm12, %v1473_v8 }
 0x991   :  { %v2849_v62 = vpop.f32.mrb[24].mxu0 }
 0x992   :  { %v1681_v0 = vadd.f32 %v3185_v61, %v2849_v62  ;;  %v1675_v3 = vpop.f32.mrb[25].mxu0  ;;  %v2194_v62 = vld [vmem:[#allocation2 + $0x128] sm:$0xff] }
 0x993   :  { %v1676_v5 = vadd.f32 %v3187_v63, %v1675_v3 }
 0x994   :  { %v1705_v17 = vmax.f32 %v1681_v0, 0.0 }
 0x995   :  { %v1704_v20 = vmax.f32 %v1676_v5, 0.0  ;;  %v2852_v59 = vpop.f32.mrb[26].mxu0 }
 0x996   :  { %v1691_v58 = vadd.f32 %v3189_v18, %v2852_v59  ;;  %v1685_v22 = vpop.f32.mrb[27].mxu0 }
 0x997   :  { %v3057_v23 = vpack.c.bf16 %v1705_v17, %v1704_v20  ;;  %v1686_v24 = vadd.f32 %v3191_v21, %v1685_v22 }
 0x998   :  { %v1707_v6 = vmax.f32 %v1691_v58, 0.0 }
 0x999   :  { %v1706_v25 = vmax.f32 %v1686_v24, 0.0  ;;  %v2855_v7 = vpop.f32.mrb[28].mxu0  ;;  %3058 = vmatprep.subr.bf16.mxu0 %v3057_v23 }
 0x99a   :  { %v1701_v9 = vadd.f32 %v3193_v15, %v2855_v7  ;;  %v1695_v30 = vpop.f32.mrb[29].mxu0  ;;  %3060 = vmatpush3.bf16.msra.mxu0 %v3057_v23 }
 0x99b   :  { %v3061_v34 = vpack.c.bf16 %v1707_v6, %v1706_v25  ;;  %v1696_v19 = vadd.f32 %v3195_v26, %v1695_v30 }
 0x99c   :  { %v1709_v35 = vmax.f32 %v1701_v9, 0.0 }
 0x99d   :  { %v1708_v12 = vmax.f32 %v1696_v19, 0.0  ;;  %3062 = vmatprep.subr.bf16.mxu0 %v3061_v34 }
 0x99e   :  { %3064 = vmatpush3.bf16.msra.mxu0 %v3061_v34 }
 0x99f   :  { %v3065_v39 = vpack.c.bf16 %v1709_v35, %v1708_v12 }
 0x9a1   :  { %3066 = vmatprep.subr.bf16.mxu0 %v3065_v39 }
 0x9a2   :  { %3068 = vmatpush3.bf16.msra.mxu0 %v3065_v39 }
 0x9a3   :  { %3078 = vmatprep.subr.bf16.mxu0 %v3077_v28 }
 0x9a5   :  { %2869 = vmatmul.mubr.msk.f32.vlgmr.msra.gmra.mrb[30].mxu0 %vm491_vm9, %v3527_v43 }
 0x9a6   :  { %3080 = vmatpush3.bf16.msra.mxu0 %v3077_v28  ;;  %2890 = vmatprep.mubr.msk.f32.mxu0 %vm54_vm0, %v3187_v63  ;;  %v2195_v63 = vld [vmem:[#allocation2 + $0x130] sm:$0xff] }
 0x9a7   :  { %3082 = vmatprep.subr.bf16.mxu0 %v3081_v45 }
 0x9aa   :  { %3084 = vmatpush3.bf16.msra.mxu0 %v3081_v45 }
 0x9ad   :  { %2891 = vmatmul.mubr.msk.f32.vlgmr.msra.gmra.mrb[32].mxu0 %vm54_vm0, %v3185_v61 }
 0x9ae   :  { %2893 = vmatprep.mubr.msk.f32.mxu0 %vm54_vm0, %v3191_v21 }
 0x9b1   :  { %2894 = vmatmul.mubr.msk.f32.gmra.mrb[34].mxu0 %vm54_vm0, %v3189_v18 }
 0x9b2   :  { %2896 = vmatprep.mubr.msk.f32.mxu0 %vm54_vm0, %v3195_v26 }
 0x9b5   :  { %2897 = vmatmul.mubr.msk.f32.gmra.mrb[36].mxu0 %vm54_vm0, %v3193_v15 }
 0xa78   :  { %v2870_v46 = vpop.f32.mrb[30].mxu0 }
 0xa79   :  { %v1776_v16 = vpop.f32.mrb[31].mxu0  ;;  %v1782_v48 = vadd.f32 %v3634_v52, %v2870_v46  ;;  %v1793_v52 = vrot.slane %v3671_v27, %v250_v49  ;;  %v2193_v49 = vld [vmem:[#allocation2 + $0x120] sm:$0xff] }
 0xa7a   :  { %v1777_v47 = vadd.f32 %v3636_v53, %v1776_v16  ;;  %v3101_v0 = vpack.c.bf16 %v2194_v62, %v2193_v49 }
 0xa7c   :  { %2879 = vmatprep.mubr.msk.f32.mxu1 %vm54_vm0, %v1777_v47  ;;  %3102 = vmatprep.subr.bf16.mxu0 %v3101_v0 }
 0xa7d   :  { %2880 = vmatmul.mubr.msk.f32.vlgmr.msra.gmra.mrb[30].mxu1 %vm54_vm0, %v1782_v48  ;;  %3104 = vmatpush3.bf16.msra.mxu0 %v3101_v0 }
 0xa7e   :  { %2903 = vmatprep.mubr.msk.f32.mxu1 %vm371_vm1, %v3450_v42 }
 0xa80   :  { %v2892_v50 = vpop.f32.mrb[32].mxu0 }
 0xa81   :  { %v1981_v51 = vpop.f32.mrb[33].mxu0 }
 0xa84   :  { %v2895_v54 = vpop.f32.mrb[34].mxu0 }
 0xa85   :  { %v1991_v55 = vpop.f32.mrb[35].mxu0 }
 0xa88   :  { %v2898_v8 = vpop.f32.mrb[36].mxu0 }
 0xa89   :  { %v2001_v56 = vpop.f32.mrb[37].mxu0 }
 0xb50   :  { %v2881_v53 = vpop.f32.mrb[30].mxu1 }
 0xb51   :  { %v1872_v57 = vadd.f32 %v2881_v53, %v1793_v52  ;;  %v1866_v4 = vpop.f32.mrb[31].mxu1 }
 0xb52   :  { %v1867_v14 = vadd.f32 %v1866_v4, %v1793_v52 }
 0xb53   :  { %3196 = vtanh.f32 %v1872_v57 }
 0xb54   :  { %3198 = vtanh.f32 %v1867_v14 }
 0xb5d   :  { %v3676_v42 = vpop.eup %3196 }
 0xb5e   :  { %v3678_v60 = vpop.eup %3198  ;;  %1881 = vrot.lane.b32.xlu0 %v3676_v42, %s3277_s19 }
 0xb5f   :  { %1879 = vrot.lane.b32.xlu1 %v3678_v60, %s3277_s19  ;;  %v3085_v61 = vpack.c.bf16 %v3676_v42, %v3678_v60 }
 0xb61   :  { %3086 = vmatprep.subr.bf16.mxu1 %v3085_v61 }
 0xb62   :  { %3088 = vmatpush3.bf16.msra.mxu1 %v3085_v61 }
 0xb65   :  { %2904 = vmatmul.mubr.msk.f32.vlgmr.msra.gmra.mrb[32].mxu1 %vm371_vm1, %v3479_v29  ;;  %v2196_v29 = vld [vmem:[#allocation2 + $0x138] sm:$0xff] }
 0xb66   :  { %2906 = vmatprep.mubr.msk.f32.mxu1 %vm371_vm1, %v3476_v13  ;;  %v3105_v3 = vpack.c.bf16 %v2196_v29, %v2195_v63 }
 0xb68   :  { %3106 = vmatprep.subr.bf16.mxu0 %v3105_v3 }
 0xb69   :  { %2907 = vmatmul.mubr.msk.f32.gmra.mrb[34].mxu1 %vm371_vm1, %v3488_v31  ;;  %3108 = vmatpush3.bf16.msra.mxu0 %v3105_v3 }
 0xb6a   :  { %2909 = vmatprep.mubr.msk.f32.mxu1 %vm371_vm1, %v3491_v32  ;;  %v1896_v32 = vrot.slane %v3519_v2, %v165_v11 }
 0xb6c   :  { %v1997_v5 = vadd.f32 %v2895_v54, %v1896_v32  ;;  %v1992_v17 = vadd.f32 %v1991_v55, %v1896_v32  ;;  %v2007_v18 = vadd.f32 %v2898_v8, %v1896_v32  ;;  %v2002_v20 = vadd.f32 %v2001_v56, %v1896_v32  ;;  %v2288_v54 = vld [vmem:[#allocation2 + $0x148] sm:$0xff]  ;;  %v2289_v55 = vld [vmem:[#allocation2 + $0x150] sm:$0xff]  ;;  %v2290_v56 = vld [vmem:[#allocation2 + $0x158] sm:$0xff] }
 0xb6d   :  { %2910 = vmatmul.mubr.msk.f32.gmra.mrb[36].mxu1 %vm371_vm1, %v3499_v33  ;;  %v1987_v33 = vadd.f32 %v2892_v50, %v1896_v32  ;;  %v3113_v52 = vpack.c.bf16 %v2290_v56, %v2289_v55 }
 0xb6e   :  { %2924 = vmatprep.mubr.msk.f32.mxu1 %vm491_vm9, %v3511_v40  ;;  %v1982_v40 = vadd.f32 %v1981_v51, %v1896_v32  ;;  %v2287_v51 = vld [vmem:[#allocation2 + $0x140] sm:$0xff] }
 0xb6f   :  { %3200 = vtanh.f32 %v1987_v33  ;;  %v3109_v8 = vpack.c.bf16 %v2288_v54, %v2287_v51 }
 0xb70   :  { %3202 = vtanh.f32 %v1982_v40 }
 0xb71   :  { %3204 = vtanh.f32 %v1997_v5 }
 0xb72   :  { %3206 = vtanh.f32 %v1992_v17 }
 0xb73   :  { %3208 = vtanh.f32 %v2007_v18 }
 0xb74   :  { %3210 = vtanh.f32 %v2002_v20 }
 0xb79   :  { %v3201_v59 = vpop.eup %3200 }
 0xb7a   :  { %v3203_v58 = vpop.eup %3202 }
 0xb7b   :  { %v3205_v11 = vpop.eup %3204 }
 0xb7c   :  { %v3207_v25 = vpop.eup %3206 }
 0xb7d   :  { %v3209_v19 = vpop.eup %3208 }
 0xb7e   :  { %v3211_v38 = vpop.eup %3210 }
 0xbd0   :  { %v1882_v13 = vpop.permute.xlu0 %1881 }
 0xbd1   :  { %1887 = vst.msk [vmem:[#allocation5 + $0x10] sm:$0xff] %vm1885_vm13, %v1882_v13  ;;  %v1880_v31 = vpop.permute.xlu1 %1879 }
 0xbd2   :  { %1886 = vst.msk [vmem:[#allocation5] sm:$0xff] %vm1885_vm13, %v1880_v31 }
 0xc38   :  { %v2905_v21 = vpop.f32.mrb[32].mxu1 }
 0xc39   :  { %v2088_v22 = vadd.f32 %v3201_v59, %v2905_v21  ;;  %v2082_v23 = vpop.f32.mrb[33].mxu1 }
 0xc3a   :  { %v2083_v24 = vadd.f32 %v3203_v58, %v2082_v23 }
 0xc3b   :  { %v2112_v6 = vmax.f32 %v2088_v22, 0.0 }
 0xc3c   :  { %v2111_v2 = vmax.f32 %v2083_v24, 0.0  ;;  %v2908_v15 = vpop.f32.mrb[34].mxu1 }
 0xc3d   :  { %v2098_v7 = vadd.f32 %v3205_v11, %v2908_v15  ;;  %v2092_v26 = vpop.f32.mrb[35].mxu1 }
 0xc3e   :  { %v3089_v9 = vpack.c.bf16 %v2112_v6, %v2111_v2  ;;  %v2093_v30 = vadd.f32 %v3207_v25, %v2092_v26 }
 0xc3f   :  { %v2114_v34 = vmax.f32 %v2098_v7, 0.0 }
 0xc40   :  { %v2113_v35 = vmax.f32 %v2093_v30, 0.0  ;;  %v2911_v36 = vpop.f32.mrb[36].mxu1  ;;  %3090 = vmatprep.subr.bf16.mxu1 %v3089_v9 }
 0xc41   :  { %v2108_v12 = vadd.f32 %v3209_v19, %v2911_v36  ;;  %v2102_v39 = vpop.f32.mrb[37].mxu1  ;;  %3092 = vmatpush3.bf16.msra.mxu1 %v3089_v9 }
 0xc42   :  { %v3093_v28 = vpack.c.bf16 %v2114_v34, %v2113_v35  ;;  %v2103_v44 = vadd.f32 %v3211_v38, %v2102_v39 }
 0xc43   :  { %v2116_v37 = vmax.f32 %v2108_v12, 0.0 }
 0xc44   :  { %v2115_v45 = vmax.f32 %v2103_v44, 0.0  ;;  %3094 = vmatprep.subr.bf16.mxu1 %v3093_v28 }
 0xc45   :  { %3096 = vmatpush3.bf16.msra.mxu1 %v3093_v28 }
 0xc46   :  { %v3097_v46 = vpack.c.bf16 %v2116_v37, %v2115_v45 }
 0xc48   :  { %3098 = vmatprep.subr.bf16.mxu1 %v3097_v46 }
 0xc49   :  { %3100 = vmatpush3.bf16.msra.mxu1 %v3097_v46 }
 0xc4a   :  { %3110 = vmatprep.subr.bf16.mxu1 %v3109_v8 }
 0xc4c   :  { %2925 = vmatmul.mubr.msk.f32.vlgmr.msra.gmra.mrb[38].mxu1 %vm491_vm9, %v3527_v43  ;;  %v2200_v43 = vrot.slane %v3671_v27, %v674_v1 }
 0xc4d   :  { %3112 = vmatpush3.bf16.msra.mxu1 %v3109_v8 }
 0xc4e   :  { %3114 = vmatprep.subr.bf16.mxu1 %v3113_v52 }
 0xc51   :  { %3116 = vmatpush3.bf16.msra.mxu1 %v3113_v52 }
 0xd1f   :  { %v2926_v16 = vpop.f32.mrb[38].mxu1 }
 0xd20   :  { %v2183_v47 = vpop.f32.mrb[39].mxu1  ;;  %v2189_v50 = vadd.f32 %v3676_v42, %v2926_v16 }
 0xd21   :  { %v2184_v48 = vadd.f32 %v3678_v60, %v2183_v47 }
 0xd23   :  { %2935 = vmatprep.mubr.msk.f32.mxu0 %vm54_vm0, %v2184_v48 }
 0xd24   :  { %2936 = vmatmul.mubr.msk.f32.vlgmr.msra.gmra.mrb[38].mxu0 %vm54_vm0, %v2189_v50 }
 0xdf7   :  { %v2937_v53 = vpop.f32.mrb[38].mxu0 }
 0xdf8   :  { %v2279_v57 = vadd.f32 %v2937_v53, %v2200_v43  ;;  %v2273_v4 = vpop.f32.mrb[39].mxu0 }
 0xdf9   :  { %v2274_v14 = vadd.f32 %v2273_v4, %v2200_v43 }
 0xdfa   :  { %3212 = vtanh.f32 %v2279_v57 }
 0xdfb   :  { %3214 = vtanh.f32 %v2274_v14 }
 0xe04   :  { %v3213_v42 = vpop.eup %3212 }
 0xe05   :  { %v3215_v60 = vpop.eup %3214  ;;  %2285 = vst.msk [vmem:[#allocation5 + $0x18] sm:$0xff] %vm54_vm0, %v3213_v42 }
 0xe06   :  { %2946 = vmatprep.mubr.msk.f32.mxu1 %vm54_vm0, %v3215_v60  ;;  %2284 = vst.msk [vmem:[#allocation5 + $0x8] sm:$0xff] %vm54_vm0, %v3215_v60 }
 0xe07   :  { %2947 = vmatmul.mubr.msk.f32.vlgmr.msra.gmra.mrb[40].mxu1 %vm54_vm0, %v3213_v42 }
 0xeda   :  { %v2948_v41 = vpop.f32.mrb[40].mxu1 }
 0xedb   :  { %3216 = vtanh.f32 %v2948_v41  ;;  %v2363_v10 = vpop.f32.mrb[41].mxu1 }
 0xedc   :  { %3218 = vtanh.f32 %v2363_v10 }
 0xee5   :  { %v3217_v1 = vpop.eup %3216 }
 0xee6   :  { %v3219_v27 = vpop.eup %3218  ;;  %2378 = vrot.lane.b32.xlu0 %v3217_v1, %s3275_s15 }
 0xee7   :  { %2376 = vrot.lane.b32.xlu1 %v3219_v27, %s3275_s15 }
 0xf58   :  { %v2379_v61 = vpop.permute.xlu0 %2378 }
 0xf59   :  { %2383 = vst.msk [vmem:[#allocation5 + $0x18] sm:$0xff] %vm1071_vm11, %v2379_v61  ;;  %v2377_v49 = vpop.permute.xlu1 %2376 }
 0xf5a   :  { %2382 = vst.msk [vmem:[#allocation5 + $0x8] sm:$0xff] %vm1071_vm11, %v2377_v49 }
 0xf5b   :  { %3254 = shalt.err (!%p3251_p12)
}
 0xf5c   :  { %s3255_s0 = scalar_lea.hbm %s3736_s6, 512 }
 0xf5d   :  { %p3256_p13 = scmp.ne.s32.totalorder %s3736_s6, %s3255_s0  ;;  %p3259_p0 = scmp.lt.u32.totalorder %s3255_s0, %s3736_s6 }
 0xf5f   :  { %p3261_p1 = pnand %p3259_p0, %p3256_p13 }
 0xf61   :  { %3264 = shalt.err (!%p3261_p1)
}
 0xf62   :  { %s3279_s28 = smov 256   ;;  %s3280_s29 = smov 16  }
 0xf63   :  { %2395 = dma.vmem_to_hbm [thread:$0]  %s2390_s20, 512, %s3736_s6, [#allocation4], %s3279_s28, %s3279_s28, %s3280_s29  }
 0xf64   :  { %3267 = dma.done.wait [#allocation4], 512  }
 0xf65   :  { %3268 = vsyncadd [#allocation4], 4294966784 }
 0xf66   :  { %2399 = vsyncpa [#allocation3], 1 }
 0xf67   :  { %2400 = vsyncpa [#allocation4], 1 }

</bundles_post_ra>
